<compile_context>
chip_gen: v5e
topology: v5e:2x2
jax: 0.10.0
libtpu: 0.0.40
codegen_flags: <defaults>
</compile_context>

<pallas_src>
import functools

import jax
import jax.numpy as jnp
from jax.experimental import pallas as pl
from jax.experimental.pallas import tpu as pltpu


# --------------------------------------------------------------------------- #
# Fused Pallas kernel
# --------------------------------------------------------------------------- #
def _gca_fused_kernel(x_ref, wa_ref, ba_ref, w1_ref, b1_ref, w2_ref, b2_ref,
                      mask_ref, o_ref, ybuf, zbuf, *, img_w, mxu_dtype):
    s_len = x_ref.shape[-1]                               # S = H * W (lane axis)

    def mm(a, b):
        if mxu_dtype is not None:                         # bf16 feed, f32 accumulate
            a = a.astype(mxu_dtype)
            b = b.astype(mxu_dtype)
        return jnp.dot(a, b, preferred_element_type=jnp.float32)

    # ---- stage A: channel_shuffle -> nums x (1x1 conv + ReLU) -> cat -> channel_shuffle,
    #      all folded into one permuted (C, C) matmul + bias + ReLU.
    x = x_ref[0]                                                      # (C, S)
    y = jnp.maximum(mm(wa_ref[...], x) + ba_ref[...], 0.0)            # (C, S)

    def conv3x3_bn_relu(src, buf, w_taps, b_vec):
        """3x3 conv (stride 1, zero pad 1) + folded BN + ReLU on a (Cin, S) map in VMEM."""
        n_in = src.shape[0]
        n_out = w_taps.shape[1]
        # Doubled copy: tap (kh, kw) becomes a static lane-slice of `buf`; the border masks
        # zero out lanes whose tap would fall into the zero padding (or wrap across rows).
        buf[0:n_in, 0:s_len] = src
        buf[0:n_in, s_len:2 * s_len] = src
        acc = jnp.zeros((n_out, s_len), jnp.float32) + b_vec[...]     # (Cout, S)
        for kh in range(3):
            for kw in range(3):
                k = kh * 3 + kw
                d = (kh - 1) * img_w + (kw - 1)                       # flat spatial shift
                dm = d % s_len
                tap = buf[0:n_in, dm:dm + s_len] * mask_ref[k]        # (Cin, S), zero-padded
                acc = acc + mm(w_taps[k], tap)
        return jnp.maximum(acc, 0.0)

    # ---- stage B: gb_se conv1 3x3, C -> C // nums_blocks (BN folded), ReLU
    z = conv3x3_bn_relu(y, ybuf, w1_ref, b1_ref)                      # (M, S)
    # ---- stage C: gb_se conv2 3x3, C // nums_blocks -> C (BN folded), ReLU
    out = conv3x3_bn_relu(z, zbuf, w2_ref, b2_ref)                    # (C, S)
    o_ref[0] = out.astype(o_ref.dtype)


def _conv3x3_pad_masks(h, w):
    """(9, 1, H*W) f32: mask[k, 0, s] == 1 iff tap k = kh*3+kw of output pixel s is in-image."""
    s = jnp.arange(h * w, dtype=jnp.int32)
    hh, ww = s // w, s % w
    rows = []
    for kh in range(3):
        for kw in range(3):
            ok = ((hh + (kh - 1) >= 0) & (hh + (kh - 1) < h) &
                  (ww + (kw - 1) >= 0) & (ww + (kw - 1) < w))
            rows.append(ok.astype(jnp.float32))
    return jnp.stack(rows, axis=0).reshape(9, 1, h * w)


@functools.partial(jax.jit, static_argnames=("nums_blocks", "mxu_dtype"))
def group_channel_attention_forward(x, params, nums_blocks, mxu_dtype=None):
    B, C, H, W = x.shape
    assert C % nums_blocks == 0
    S = H * W
    M = C // nums_blocks                                   # == module's self.nums
    masks = _conv3x3_pad_masks(H, W)
    kernel = functools.partial(_gca_fused_kernel, img_w=W, mxu_dtype=mxu_dtype)
    out = pl.pallas_call(
        kernel,
        out_shape=jax.ShapeDtypeStruct((B, C, S), jnp.float32),
        grid=(B,),
        in_specs=[
            pl.BlockSpec((1, C, S), lambda b: (b, 0, 0)),   # x, flattened spatial on lanes
            pl.BlockSpec((C, C), lambda b: (0, 0)),         # fused shuffle/grouped-1x1 weight
            pl.BlockSpec((C, 1), lambda b: (0, 0)),         # fused grouped-1x1 bias
            pl.BlockSpec((9, M, C), lambda b: (0, 0, 0)),   # conv1 per-tap weights (BN folded)
            pl.BlockSpec((M, 1), lambda b: (0, 0)),         # conv1 bias (BN folded)
            pl.BlockSpec((9, C, M), lambda b: (0, 0, 0)),   # conv2 per-tap weights (BN folded)
            pl.BlockSpec((C, 1), lambda b: (0, 0)),         # conv2 bias (BN folded)
            pl.BlockSpec((9, 1, S), lambda b: (0, 0, 0)),   # zero-padding masks
        ],
        out_specs=pl.BlockSpec((1, C, S), lambda b: (b, 0, 0)),
        scratch_shapes=[
            pltpu.VMEM((C, 2 * S), jnp.float32),            # doubled buffer: conv1 input taps
            pltpu.VMEM((M, 2 * S), jnp.float32),            # doubled buffer: conv2 input taps
        ],
        compiler_params=pltpu.CompilerParams(
            dimension_semantics=("parallel",)),             # batch axis across TensorCores
    )(x.reshape(B, C, S), params["wa"], params["ba"], params["w1"], params["b1"],
      params["w2"], params["b2"], masks)
    return out.reshape(B, C, H, W)


# --------------------------------------------------------------------------- #
# Parameters (PyTorch-style init) + folding of shuffles / BN into kernel weights
# --------------------------------------------------------------------------- #
def fold_bn(w, b, gamma, beta, mean, var, eps=1e-5):
    scale = gamma / jnp.sqrt(var + eps)
    return w * scale[:, None, None, None], scale * (b - mean) + beta


def make_params(key, in_dims, nums_blocks):
    C, g = in_dims, nums_blocks
    M = C // g
    keys = iter(jax.random.split(key, 2 * M + 12))

    def u(shape, fan_in):
        bound = 1.0 / float(fan_in) ** 0.5
        return jax.random.uniform(next(keys), shape, jnp.float32, -bound, bound)

    def bn(n):
        gamma = 1.0 + 0.1 * jax.random.normal(next(keys), (n,), jnp.float32)
        beta = 0.05 * jax.random.normal(next(keys), (n,), jnp.float32)
        mean = 0.1 * jax.random.normal(next(keys), (n,), jnp.float32)
        var = 1.0 + 0.1 * jnp.abs(jax.random.normal(next(keys), (n,), jnp.float32))
        return gamma, beta, mean, var

    raw = {"layer_w": [], "layer_b": []}
    for _ in range(M):                                    # nums x Conv2d(C, g, 1)
        raw["layer_w"].append(u((g, C, 1, 1), C))
        raw["layer_b"].append(u((g,), C))
    raw["conv1_w"] = u((M, C, 3, 3), C * 9)               # Conv2d(C, M, 3, padding=1)
    raw["conv1_b"] = u((M,), C * 9)
    raw["bn1"] = bn(M)
    raw["conv2_w"] = u((C, M, 3, 3), M * 9)               # Conv2d(M, C, 3, padding=1)
    raw["conv2_b"] = u((C,), M * 9)
    raw["bn2"] = bn(C)

    # Fold channel_shuffle -> grouped 1x1 convs -> cat -> channel_shuffle into one matmul:
    #   shuffle_g(ReLU(W_stack @ shuffle_g(x) + b_stack)) == ReLU(wa @ x + ba)
    w_stack = jnp.concatenate([w[:, :, 0, 0] for w in raw["layer_w"]], axis=0)   # (C, C)
    b_stack = jnp.concatenate(raw["layer_b"], axis=0)                            # (C,)
    perm = jnp.arange(C).reshape(g, M).T.reshape(-1)      # channel_shuffle(., g) index map
    inv_perm = jnp.argsort(perm)
    wa = w_stack[perm][:, inv_perm]
    ba = b_stack[perm]

    # Fold inference-mode BN into the 3x3 convs, reorder weights per tap: (9, Cout, Cin).
    w1f, b1f = fold_bn(raw["conv1_w"], raw["conv1_b"], *raw["bn1"])
    w2f, b2f = fold_bn(raw["conv2_w"], raw["conv2_b"], *raw["bn2"])
    packed = {
        "wa": wa, "ba": ba.reshape(C, 1),
        "w1": w1f.transpose(2, 3, 0, 1).reshape(9, M, C), "b1": b1f.reshape(M, 1),
        "w2": w2f.transpose(2, 3, 0, 1).reshape(9, C, M), "b2": b2f.reshape(C, 1),
    }
    return raw, packed


# --------------------------------------------------------------------------- #
# Pure-JAX reference (unfused) for correctness checking
# --------------------------------------------------------------------------- #
def channel_shuffle(x, groups):
    b, c, h, w = x.shape
    return x.reshape(b, groups, c // groups, h, w).transpose(0, 2, 1, 3, 4).reshape(b, c, h, w)


def reference_forward(x, raw, nums_blocks):
    g = nums_blocks
    C = x.shape[1]
    M = C // g
    dn = ("NCHW", "OIHW", "NCHW")
    hp = jax.lax.Precision.HIGHEST

    def conv(v, w, pad):
        return jax.lax.conv_general_dilated(v, w, (1, 1), pad,
                                            dimension_numbers=dn, precision=hp)

    def bnorm(z, p):
        gamma, beta, mean, var = p
        inv = (gamma / jnp.sqrt(var + 1e-5))[None, :, None, None]
        return (z - mean[None, :, None, None]) * inv + beta[None, :, None, None]

    xs = channel_shuffle(x, g)
    feats = [jax.nn.relu(conv(xs, raw["layer_w"][i], "VALID")
                         + raw["layer_b"][i][None, :, None, None]) for i in range(M)]
    fm = channel_shuffle(jnp.concatenate(feats, axis=1), g)

    z = jax.nn.relu(bnorm(conv(fm, raw["conv1_w"], "SAME")
                          + raw["conv1_b"][None, :, None, None], raw["bn1"]))
    return jax.nn.relu(bnorm(conv(z, raw["conv2_w"], "SAME")
                             + raw["conv2_b"][None, :, None, None], raw["bn2"]))


# --------------------------------------------------------------------------- #
if __name__ == "__main__":
    key = jax.random.PRNGKey(0)
    kx, kp = jax.random.split(key)

    B, C, H, W = 2, 32, 16, 16          # in_dims = 32
    nums_blocks = 4                     # module: nums = 32 // 4 = 8 grouped 1x1 convs
    x = jax.random.normal(kx, (B, C, H, W), jnp.float32)
    raw, packed = make_params(kp, C, nums_blocks)

    out = group_channel_attention_forward(x, packed, nums_blocks=nums_blocks)
    out = jax.block_until_ready(out)
    assert out.shape == (B, C, H, W)
    assert bool(jnp.all(jnp.isfinite(out)))

    ref = reference_forward(x, raw, nums_blocks)
    assert bool(jnp.allclose(out, ref, rtol=2e-2, atol=2e-2)), (
        f"mismatch vs reference: max abs err {float(jnp.max(jnp.abs(out - ref)))}")

    # bf16 MXU-operand fast path (v6e/v7x), f32 accumulation.
    out_bf16 = group_channel_attention_forward(x, packed, nums_blocks=nums_blocks,
                                               mxu_dtype=jnp.bfloat16)
    out_bf16 = jax.block_until_ready(out_bf16)
    assert bool(jnp.allclose(out_bf16, ref, rtol=1e-1, atol=1e-1))

    print("KERNEL_OK")
</pallas_src>

<mosaic_0001>
module attributes {stable_mosaic.version = 11 : i64} {
  func.func @_gca_fused_kernel(%arg0: i32, %arg1: memref<1x32x256xf32, #tpu.memory_space<vmem>>, %arg2: memref<32x32xf32, #tpu.memory_space<vmem>>, %arg3: memref<32x1xf32, #tpu.memory_space<vmem>>, %arg4: memref<9x8x32xf32, #tpu.memory_space<vmem>>, %arg5: memref<8x1xf32, #tpu.memory_space<vmem>>, %arg6: memref<9x32x8xf32, #tpu.memory_space<vmem>>, %arg7: memref<32x1xf32, #tpu.memory_space<vmem>>, %arg8: memref<9x1x256xf32, #tpu.memory_space<vmem>>, %arg9: memref<1x32x256xf32, #tpu.memory_space<vmem>>, %arg10: memref<32x512xf32, #tpu.memory_space<vmem>>, %arg11: memref<8x512xf32, #tpu.memory_space<vmem>>) attributes {dimension_semantics = [#tpu.dimension_semantics<parallel>], iteration_bounds = array<i64: 2>, scalar_prefetch = 0 : i64, scratch_operands = 2 : i64, tpu.core_type = #tpu.core_type<tc>, window_params = [{transform_indices = @transform_0, window_bounds = array<i64: 1, 32, 256>}, {pipeline_mode = #tpu.pipeline_mode<synchronous>, transform_indices = @transform_1, window_bounds = array<i64: 32, 32>}, {pipeline_mode = #tpu.pipeline_mode<synchronous>, transform_indices = @transform_2, window_bounds = array<i64: 32, 1>}, {pipeline_mode = #tpu.pipeline_mode<synchronous>, transform_indices = @transform_3, window_bounds = array<i64: 9, 8, 32>}, {pipeline_mode = #tpu.pipeline_mode<synchronous>, transform_indices = @transform_4, window_bounds = array<i64: 8, 1>}, {pipeline_mode = #tpu.pipeline_mode<synchronous>, transform_indices = @transform_5, window_bounds = array<i64: 9, 32, 8>}, {pipeline_mode = #tpu.pipeline_mode<synchronous>, transform_indices = @transform_6, window_bounds = array<i64: 32, 1>}, {pipeline_mode = #tpu.pipeline_mode<synchronous>, transform_indices = @transform_7, window_bounds = array<i64: 9, 1, 256>}, {transform_indices = @transform_8, window_bounds = array<i64: 1, 32, 256>}]} {
    %c0 = arith.constant 0 : index
    %c0_0 = arith.constant 0 : index
    %c0_1 = arith.constant 0 : index
    %0 = vector.load %arg1[%c0, %c0_0, %c0_1] : memref<1x32x256xf32, #tpu.memory_space<vmem>>, vector<1x32x256xf32>
    %1 = vector.shape_cast %0 : vector<1x32x256xf32> to vector<32x256xf32>
    %c0_2 = arith.constant 0 : index
    %c0_3 = arith.constant 0 : index
    %2 = vector.load %arg2[%c0_2, %c0_3] : memref<32x32xf32, #tpu.memory_space<vmem>>, vector<32x32xf32>
    %cst = arith.constant dense<0.000000e+00> : vector<32x256xf32>
    %3 = tpu.matmul %2, %1, %cst {dimension_numbers = #tpu.dot_dimension_numbers<[1], [0], [0], [1], [0, 0, 1, 1], [], []>} : vector<32x32xf32>, vector<32x256xf32>, vector<32x256xf32> -> vector<32x256xf32>
    %c0_4 = arith.constant 0 : index
    %c0_5 = arith.constant 0 : index
    %4 = vector.load %arg3[%c0_4, %c0_5] : memref<32x1xf32, #tpu.memory_space<vmem>>, vector<32x1xf32>
    %5 = vector.broadcast %4 : vector<32x1xf32> to vector<32x256xf32>
    %6 = arith.addf %3, %5 : vector<32x256xf32>
    %cst_6 = arith.constant 0.000000e+00 : f32
    %7 = vector.broadcast %cst_6 : f32 to vector<32x256xf32>
    %8 = arith.maximumf %6, %7 : vector<32x256xf32>
    %c0_7 = arith.constant 0 : index
    %c0_8 = arith.constant 0 : index
    %9 = vector.load %arg10[%c0_7, %c0_8] : memref<32x512xf32, #tpu.memory_space<vmem>>, vector<32x256xf32>
    tpu.vector_store %arg10[%c0_7, %c0_8], %8 {strides = array<i32>} : memref<32x512xf32, #tpu.memory_space<vmem>>, vector<32x256xf32>,
    %c0_9 = arith.constant 0 : index
    %c256 = arith.constant 256 : index
    %10 = vector.load %arg10[%c0_9, %c256] : memref<32x512xf32, #tpu.memory_space<vmem>>, vector<32x256xf32>
    tpu.vector_store %arg10[%c0_9, %c256], %8 {strides = array<i32>} : memref<32x512xf32, #tpu.memory_space<vmem>>, vector<32x256xf32>,
    %cst_10 = arith.constant 0.000000e+00 : f32
    %11 = vector.broadcast %cst_10 : f32 to vector<8x256xf32>
    %c0_11 = arith.constant 0 : index
    %c0_12 = arith.constant 0 : index
    %12 = vector.load %arg5[%c0_11, %c0_12] : memref<8x1xf32, #tpu.memory_space<vmem>>, vector<8x1xf32>
    %13 = vector.broadcast %12 : vector<8x1xf32> to vector<8x256xf32>
    %14 = arith.addf %11, %13 : vector<8x256xf32>
    %c0_13 = arith.constant 0 : index
    %c239 = arith.constant 239 : index
    %15 = vector.load %arg10[%c0_13, %c239] : memref<32x512xf32, #tpu.memory_space<vmem>>, vector<32x256xf32>
    %c0_14 = arith.constant 0 : index
    %c0_15 = arith.constant 0 : index
    %c0_16 = arith.constant 0 : index
    %16 = vector.load %arg8[%c0_14, %c0_15, %c0_16] : memref<9x1x256xf32, #tpu.memory_space<vmem>>, vector<1x1x256xf32>
    %17 = vector.shape_cast %16 : vector<1x1x256xf32> to vector<1x256xf32>
    %18 = vector.broadcast %17 : vector<1x256xf32> to vector<32x256xf32>
    %19 = arith.mulf %15, %18 : vector<32x256xf32>
    %c0_17 = arith.constant 0 : index
    %c0_18 = arith.constant 0 : index
    %c0_19 = arith.constant 0 : index
    %20 = vector.load %arg4[%c0_17, %c0_18, %c0_19] : memref<9x8x32xf32, #tpu.memory_space<vmem>>, vector<1x8x32xf32>
    %21 = vector.shape_cast %20 : vector<1x8x32xf32> to vector<8x32xf32>
    %cst_20 = arith.constant dense<0.000000e+00> : vector<8x256xf32>
    %22 = tpu.matmul %21, %19, %cst_20 {dimension_numbers = #tpu.dot_dimension_numbers<[1], [0], [0], [1], [0, 0, 1, 1], [], []>} : vector<8x32xf32>, vector<32x256xf32>, vector<8x256xf32> -> vector<8x256xf32>
    %23 = arith.addf %14, %22 : vector<8x256xf32>
    %c0_21 = arith.constant 0 : index
    %c240 = arith.constant 240 : index
    %24 = vector.load %arg10[%c0_21, %c240] : memref<32x512xf32, #tpu.memory_space<vmem>>, vector<32x256xf32>
    %c1 = arith.constant 1 : index
    %c0_22 = arith.constant 0 : index
    %c0_23 = arith.constant 0 : index
    %25 = vector.load %arg8[%c1, %c0_22, %c0_23] : memref<9x1x256xf32, #tpu.memory_space<vmem>>, vector<1x1x256xf32>
    %26 = vector.shape_cast %25 : vector<1x1x256xf32> to vector<1x256xf32>
    %27 = vector.broadcast %26 : vector<1x256xf32> to vector<32x256xf32>
    %28 = arith.mulf %24, %27 : vector<32x256xf32>
    %c1_24 = arith.constant 1 : index
    %c0_25 = arith.constant 0 : index
    %c0_26 = arith.constant 0 : index
    %29 = vector.load %arg4[%c1_24, %c0_25, %c0_26] : memref<9x8x32xf32, #tpu.memory_space<vmem>>, vector<1x8x32xf32>
    %30 = vector.shape_cast %29 : vector<1x8x32xf32> to vector<8x32xf32>
    %cst_27 = arith.constant dense<0.000000e+00> : vector<8x256xf32>
    %31 = tpu.matmul %30, %28, %cst_27 {dimension_numbers = #tpu.dot_dimension_numbers<[1], [0], [0], [1], [0, 0, 1, 1], [], []>} : vector<8x32xf32>, vector<32x256xf32>, vector<8x256xf32> -> vector<8x256xf32>
    %32 = arith.addf %23, %31 : vector<8x256xf32>
    %c0_28 = arith.constant 0 : index
    %c241 = arith.constant 241 : index
    %33 = vector.load %arg10[%c0_28, %c241] : memref<32x512xf32, #tpu.memory_space<vmem>>, vector<32x256xf32>
    %c2 = arith.constant 2 : index
    %c0_29 = arith.constant 0 : index
    %c0_30 = arith.constant 0 : index
    %34 = vector.load %arg8[%c2, %c0_29, %c0_30] : memref<9x1x256xf32, #tpu.memory_space<vmem>>, vector<1x1x256xf32>
    %35 = vector.shape_cast %34 : vector<1x1x256xf32> to vector<1x256xf32>
    %36 = vector.broadcast %35 : vector<1x256xf32> to vector<32x256xf32>
    %37 = arith.mulf %33, %36 : vector<32x256xf32>
    %c2_31 = arith.constant 2 : index
    %c0_32 = arith.constant 0 : index
    %c0_33 = arith.constant 0 : index
    %38 = vector.load %arg4[%c2_31, %c0_32, %c0_33] : memref<9x8x32xf32, #tpu.memory_space<vmem>>, vector<1x8x32xf32>
    %39 = vector.shape_cast %38 : vector<1x8x32xf32> to vector<8x32xf32>
    %cst_34 = arith.constant dense<0.000000e+00> : vector<8x256xf32>
    %40 = tpu.matmul %39, %37, %cst_34 {dimension_numbers = #tpu.dot_dimension_numbers<[1], [0], [0], [1], [0, 0, 1, 1], [], []>} : vector<8x32xf32>, vector<32x256xf32>, vector<8x256xf32> -> vector<8x256xf32>
    %41 = arith.addf %32, %40 : vector<8x256xf32>
    %c0_35 = arith.constant 0 : index
    %c255 = arith.constant 255 : index
    %42 = vector.load %arg10[%c0_35, %c255] : memref<32x512xf32, #tpu.memory_space<vmem>>, vector<32x256xf32>
    %c3 = arith.constant 3 : index
    %c0_36 = arith.constant 0 : index
    %c0_37 = arith.constant 0 : index
    %43 = vector.load %arg8[%c3, %c0_36, %c0_37] : memref<9x1x256xf32, #tpu.memory_space<vmem>>, vector<1x1x256xf32>
    %44 = vector.shape_cast %43 : vector<1x1x256xf32> to vector<1x256xf32>
    %45 = vector.broadcast %44 : vector<1x256xf32> to vector<32x256xf32>
    %46 = arith.mulf %42, %45 : vector<32x256xf32>
    %c3_38 = arith.constant 3 : index
    %c0_39 = arith.constant 0 : index
    %c0_40 = arith.constant 0 : index
    %47 = vector.load %arg4[%c3_38, %c0_39, %c0_40] : memref<9x8x32xf32, #tpu.memory_space<vmem>>, vector<1x8x32xf32>
    %48 = vector.shape_cast %47 : vector<1x8x32xf32> to vector<8x32xf32>
    %cst_41 = arith.constant dense<0.000000e+00> : vector<8x256xf32>
    %49 = tpu.matmul %48, %46, %cst_41 {dimension_numbers = #tpu.dot_dimension_numbers<[1], [0], [0], [1], [0, 0, 1, 1], [], []>} : vector<8x32xf32>, vector<32x256xf32>, vector<8x256xf32> -> vector<8x256xf32>
    %50 = arith.addf %41, %49 : vector<8x256xf32>
    %c0_42 = arith.constant 0 : index
    %c0_43 = arith.constant 0 : index
    %51 = vector.load %arg10[%c0_42, %c0_43] : memref<32x512xf32, #tpu.memory_space<vmem>>, vector<32x256xf32>
    %c4 = arith.constant 4 : index
    %c0_44 = arith.constant 0 : index
    %c0_45 = arith.constant 0 : index
    %52 = vector.load %arg8[%c4, %c0_44, %c0_45] : memref<9x1x256xf32, #tpu.memory_space<vmem>>, vector<1x1x256xf32>
    %53 = vector.shape_cast %52 : vector<1x1x256xf32> to vector<1x256xf32>
    %54 = vector.broadcast %53 : vector<1x256xf32> to vector<32x256xf32>
    %55 = arith.mulf %51, %54 : vector<32x256xf32>
    %c4_46 = arith.constant 4 : index
    %c0_47 = arith.constant 0 : index
    %c0_48 = arith.constant 0 : index
    %56 = vector.load %arg4[%c4_46, %c0_47, %c0_48] : memref<9x8x32xf32, #tpu.memory_space<vmem>>, vector<1x8x32xf32>
    %57 = vector.shape_cast %56 : vector<1x8x32xf32> to vector<8x32xf32>
    %cst_49 = arith.constant dense<0.000000e+00> : vector<8x256xf32>
    %58 = tpu.matmul %57, %55, %cst_49 {dimension_numbers = #tpu.dot_dimension_numbers<[1], [0], [0], [1], [0, 0, 1, 1], [], []>} : vector<8x32xf32>, vector<32x256xf32>, vector<8x256xf32> -> vector<8x256xf32>
    %59 = arith.addf %50, %58 : vector<8x256xf32>
    %c0_50 = arith.constant 0 : index
    %c1_51 = arith.constant 1 : index
    %60 = vector.load %arg10[%c0_50, %c1_51] : memref<32x512xf32, #tpu.memory_space<vmem>>, vector<32x256xf32>
    %c5 = arith.constant 5 : index
    %c0_52 = arith.constant 0 : index
    %c0_53 = arith.constant 0 : index
    %61 = vector.load %arg8[%c5, %c0_52, %c0_53] : memref<9x1x256xf32, #tpu.memory_space<vmem>>, vector<1x1x256xf32>
    %62 = vector.shape_cast %61 : vector<1x1x256xf32> to vector<1x256xf32>
    %63 = vector.broadcast %62 : vector<1x256xf32> to vector<32x256xf32>
    %64 = arith.mulf %60, %63 : vector<32x256xf32>
    %c5_54 = arith.constant 5 : index
    %c0_55 = arith.constant 0 : index
    %c0_56 = arith.constant 0 : index
    %65 = vector.load %arg4[%c5_54, %c0_55, %c0_56] : memref<9x8x32xf32, #tpu.memory_space<vmem>>, vector<1x8x32xf32>
    %66 = vector.shape_cast %65 : vector<1x8x32xf32> to vector<8x32xf32>
    %cst_57 = arith.constant dense<0.000000e+00> : vector<8x256xf32>
    %67 = tpu.matmul %66, %64, %cst_57 {dimension_numbers = #tpu.dot_dimension_numbers<[1], [0], [0], [1], [0, 0, 1, 1], [], []>} : vector<8x32xf32>, vector<32x256xf32>, vector<8x256xf32> -> vector<8x256xf32>
    %68 = arith.addf %59, %67 : vector<8x256xf32>
    %c0_58 = arith.constant 0 : index
    %c15 = arith.constant 15 : index
    %69 = vector.load %arg10[%c0_58, %c15] : memref<32x512xf32, #tpu.memory_space<vmem>>, vector<32x256xf32>
    %c6 = arith.constant 6 : index
    %c0_59 = arith.constant 0 : index
    %c0_60 = arith.constant 0 : index
    %70 = vector.load %arg8[%c6, %c0_59, %c0_60] : memref<9x1x256xf32, #tpu.memory_space<vmem>>, vector<1x1x256xf32>
    %71 = vector.shape_cast %70 : vector<1x1x256xf32> to vector<1x256xf32>
    %72 = vector.broadcast %71 : vector<1x256xf32> to vector<32x256xf32>
    %73 = arith.mulf %69, %72 : vector<32x256xf32>
    %c6_61 = arith.constant 6 : index
    %c0_62 = arith.constant 0 : index
    %c0_63 = arith.constant 0 : index
    %74 = vector.load %arg4[%c6_61, %c0_62, %c0_63] : memref<9x8x32xf32, #tpu.memory_space<vmem>>, vector<1x8x32xf32>
    %75 = vector.shape_cast %74 : vector<1x8x32xf32> to vector<8x32xf32>
    %cst_64 = arith.constant dense<0.000000e+00> : vector<8x256xf32>
    %76 = tpu.matmul %75, %73, %cst_64 {dimension_numbers = #tpu.dot_dimension_numbers<[1], [0], [0], [1], [0, 0, 1, 1], [], []>} : vector<8x32xf32>, vector<32x256xf32>, vector<8x256xf32> -> vector<8x256xf32>
    %77 = arith.addf %68, %76 : vector<8x256xf32>
    %c0_65 = arith.constant 0 : index
    %c16 = arith.constant 16 : index
    %78 = vector.load %arg10[%c0_65, %c16] : memref<32x512xf32, #tpu.memory_space<vmem>>, vector<32x256xf32>
    %c7 = arith.constant 7 : index
    %c0_66 = arith.constant 0 : index
    %c0_67 = arith.constant 0 : index
    %79 = vector.load %arg8[%c7, %c0_66, %c0_67] : memref<9x1x256xf32, #tpu.memory_space<vmem>>, vector<1x1x256xf32>
    %80 = vector.shape_cast %79 : vector<1x1x256xf32> to vector<1x256xf32>
    %81 = vector.broadcast %80 : vector<1x256xf32> to vector<32x256xf32>
    %82 = arith.mulf %78, %81 : vector<32x256xf32>
    %c7_68 = arith.constant 7 : index
    %c0_69 = arith.constant 0 : index
    %c0_70 = arith.constant 0 : index
    %83 = vector.load %arg4[%c7_68, %c0_69, %c0_70] : memref<9x8x32xf32, #tpu.memory_space<vmem>>, vector<1x8x32xf32>
    %84 = vector.shape_cast %83 : vector<1x8x32xf32> to vector<8x32xf32>
    %cst_71 = arith.constant dense<0.000000e+00> : vector<8x256xf32>
    %85 = tpu.matmul %84, %82, %cst_71 {dimension_numbers = #tpu.dot_dimension_numbers<[1], [0], [0], [1], [0, 0, 1, 1], [], []>} : vector<8x32xf32>, vector<32x256xf32>, vector<8x256xf32> -> vector<8x256xf32>
    %86 = arith.addf %77, %85 : vector<8x256xf32>
    %c0_72 = arith.constant 0 : index
    %c17 = arith.constant 17 : index
    %87 = vector.load %arg10[%c0_72, %c17] : memref<32x512xf32, #tpu.memory_space<vmem>>, vector<32x256xf32>
    %c8 = arith.constant 8 : index
    %c0_73 = arith.constant 0 : index
    %c0_74 = arith.constant 0 : index
    %88 = vector.load %arg8[%c8, %c0_73, %c0_74] : memref<9x1x256xf32, #tpu.memory_space<vmem>>, vector<1x1x256xf32>
    %89 = vector.shape_cast %88 : vector<1x1x256xf32> to vector<1x256xf32>
    %90 = vector.broadcast %89 : vector<1x256xf32> to vector<32x256xf32>
    %91 = arith.mulf %87, %90 : vector<32x256xf32>
    %c8_75 = arith.constant 8 : index
    %c0_76 = arith.constant 0 : index
    %c0_77 = arith.constant 0 : index
    %92 = vector.load %arg4[%c8_75, %c0_76, %c0_77] : memref<9x8x32xf32, #tpu.memory_space<vmem>>, vector<1x8x32xf32>
    %93 = vector.shape_cast %92 : vector<1x8x32xf32> to vector<8x32xf32>
    %cst_78 = arith.constant dense<0.000000e+00> : vector<8x256xf32>
    %94 = tpu.matmul %93, %91, %cst_78 {dimension_numbers = #tpu.dot_dimension_numbers<[1], [0], [0], [1], [0, 0, 1, 1], [], []>} : vector<8x32xf32>, vector<32x256xf32>, vector<8x256xf32> -> vector<8x256xf32>
    %95 = arith.addf %86, %94 : vector<8x256xf32>
    %cst_79 = arith.constant 0.000000e+00 : f32
    %96 = vector.broadcast %cst_79 : f32 to vector<8x256xf32>
    %97 = arith.maximumf %95, %96 : vector<8x256xf32>
    %c0_80 = arith.constant 0 : index
    %c0_81 = arith.constant 0 : index
    %98 = vector.load %arg11[%c0_80, %c0_81] : memref<8x512xf32, #tpu.memory_space<vmem>>, vector<8x256xf32>
    tpu.vector_store %arg11[%c0_80, %c0_81], %97 {strides = array<i32>} : memref<8x512xf32, #tpu.memory_space<vmem>>, vector<8x256xf32>,
    %c0_82 = arith.constant 0 : index
    %c256_83 = arith.constant 256 : index
    %99 = vector.load %arg11[%c0_82, %c256_83] : memref<8x512xf32, #tpu.memory_space<vmem>>, vector<8x256xf32>
    tpu.vector_store %arg11[%c0_82, %c256_83], %97 {strides = array<i32>} : memref<8x512xf32, #tpu.memory_space<vmem>>, vector<8x256xf32>,
    %cst_84 = arith.constant 0.000000e+00 : f32
    %100 = vector.broadcast %cst_84 : f32 to vector<32x256xf32>
    %c0_85 = arith.constant 0 : index
    %c0_86 = arith.constant 0 : index
    %101 = vector.load %arg7[%c0_85, %c0_86] : memref<32x1xf32, #tpu.memory_space<vmem>>, vector<32x1xf32>
    %102 = vector.broadcast %101 : vector<32x1xf32> to vector<32x256xf32>
    %103 = arith.addf %100, %102 : vector<32x256xf32>
    %c0_87 = arith.constant 0 : index
    %c239_88 = arith.constant 239 : index
    %104 = vector.load %arg11[%c0_87, %c239_88] : memref<8x512xf32, #tpu.memory_space<vmem>>, vector<8x256xf32>
    %c0_89 = arith.constant 0 : index
    %c0_90 = arith.constant 0 : index
    %c0_91 = arith.constant 0 : index
    %105 = vector.load %arg8[%c0_89, %c0_90, %c0_91] : memref<9x1x256xf32, #tpu.memory_space<vmem>>, vector<1x1x256xf32>
    %106 = vector.shape_cast %105 : vector<1x1x256xf32> to vector<1x256xf32>
    %107 = vector.broadcast %106 : vector<1x256xf32> to vector<8x256xf32>
    %108 = arith.mulf %104, %107 : vector<8x256xf32>
    %c0_92 = arith.constant 0 : index
    %c0_93 = arith.constant 0 : index
    %c0_94 = arith.constant 0 : index
    %109 = vector.load %arg6[%c0_92, %c0_93, %c0_94] : memref<9x32x8xf32, #tpu.memory_space<vmem>>, vector<1x32x8xf32>
    %110 = vector.shape_cast %109 : vector<1x32x8xf32> to vector<32x8xf32>
    %cst_95 = arith.constant dense<0.000000e+00> : vector<32x256xf32>
    %111 = tpu.matmul %110, %108, %cst_95 {dimension_numbers = #tpu.dot_dimension_numbers<[1], [0], [0], [1], [0, 0, 1, 1], [], []>} : vector<32x8xf32>, vector<8x256xf32>, vector<32x256xf32> -> vector<32x256xf32>
    %112 = arith.addf %103, %111 : vector<32x256xf32>
    %c0_96 = arith.constant 0 : index
    %c240_97 = arith.constant 240 : index
    %113 = vector.load %arg11[%c0_96, %c240_97] : memref<8x512xf32, #tpu.memory_space<vmem>>, vector<8x256xf32>
    %c1_98 = arith.constant 1 : index
    %c0_99 = arith.constant 0 : index
    %c0_100 = arith.constant 0 : index
    %114 = vector.load %arg8[%c1_98, %c0_99, %c0_100] : memref<9x1x256xf32, #tpu.memory_space<vmem>>, vector<1x1x256xf32>
    %115 = vector.shape_cast %114 : vector<1x1x256xf32> to vector<1x256xf32>
    %116 = vector.broadcast %115 : vector<1x256xf32> to vector<8x256xf32>
    %117 = arith.mulf %113, %116 : vector<8x256xf32>
    %c1_101 = arith.constant 1 : index
    %c0_102 = arith.constant 0 : index
    %c0_103 = arith.constant 0 : index
    %118 = vector.load %arg6[%c1_101, %c0_102, %c0_103] : memref<9x32x8xf32, #tpu.memory_space<vmem>>, vector<1x32x8xf32>
    %119 = vector.shape_cast %118 : vector<1x32x8xf32> to vector<32x8xf32>
    %cst_104 = arith.constant dense<0.000000e+00> : vector<32x256xf32>
    %120 = tpu.matmul %119, %117, %cst_104 {dimension_numbers = #tpu.dot_dimension_numbers<[1], [0], [0], [1], [0, 0, 1, 1], [], []>} : vector<32x8xf32>, vector<8x256xf32>, vector<32x256xf32> -> vector<32x256xf32>
    %121 = arith.addf %112, %120 : vector<32x256xf32>
    %c0_105 = arith.constant 0 : index
    %c241_106 = arith.constant 241 : index
    %122 = vector.load %arg11[%c0_105, %c241_106] : memref<8x512xf32, #tpu.memory_space<vmem>>, vector<8x256xf32>
    %c2_107 = arith.constant 2 : index
    %c0_108 = arith.constant 0 : index
    %c0_109 = arith.constant 0 : index
    %123 = vector.load %arg8[%c2_107, %c0_108, %c0_109] : memref<9x1x256xf32, #tpu.memory_space<vmem>>, vector<1x1x256xf32>
    %124 = vector.shape_cast %123 : vector<1x1x256xf32> to vector<1x256xf32>
    %125 = vector.broadcast %124 : vector<1x256xf32> to vector<8x256xf32>
    %126 = arith.mulf %122, %125 : vector<8x256xf32>
    %c2_110 = arith.constant 2 : index
    %c0_111 = arith.constant 0 : index
    %c0_112 = arith.constant 0 : index
    %127 = vector.load %arg6[%c2_110, %c0_111, %c0_112] : memref<9x32x8xf32, #tpu.memory_space<vmem>>, vector<1x32x8xf32>
    %128 = vector.shape_cast %127 : vector<1x32x8xf32> to vector<32x8xf32>
    %cst_113 = arith.constant dense<0.000000e+00> : vector<32x256xf32>
    %129 = tpu.matmul %128, %126, %cst_113 {dimension_numbers = #tpu.dot_dimension_numbers<[1], [0], [0], [1], [0, 0, 1, 1], [], []>} : vector<32x8xf32>, vector<8x256xf32>, vector<32x256xf32> -> vector<32x256xf32>
    %130 = arith.addf %121, %129 : vector<32x256xf32>
    %c0_114 = arith.constant 0 : index
    %c255_115 = arith.constant 255 : index
    %131 = vector.load %arg11[%c0_114, %c255_115] : memref<8x512xf32, #tpu.memory_space<vmem>>, vector<8x256xf32>
    %c3_116 = arith.constant 3 : index
    %c0_117 = arith.constant 0 : index
    %c0_118 = arith.constant 0 : index
    %132 = vector.load %arg8[%c3_116, %c0_117, %c0_118] : memref<9x1x256xf32, #tpu.memory_space<vmem>>, vector<1x1x256xf32>
    %133 = vector.shape_cast %132 : vector<1x1x256xf32> to vector<1x256xf32>
    %134 = vector.broadcast %133 : vector<1x256xf32> to vector<8x256xf32>
    %135 = arith.mulf %131, %134 : vector<8x256xf32>
    %c3_119 = arith.constant 3 : index
    %c0_120 = arith.constant 0 : index
    %c0_121 = arith.constant 0 : index
    %136 = vector.load %arg6[%c3_119, %c0_120, %c0_121] : memref<9x32x8xf32, #tpu.memory_space<vmem>>, vector<1x32x8xf32>
    %137 = vector.shape_cast %136 : vector<1x32x8xf32> to vector<32x8xf32>
    %cst_122 = arith.constant dense<0.000000e+00> : vector<32x256xf32>
    %138 = tpu.matmul %137, %135, %cst_122 {dimension_numbers = #tpu.dot_dimension_numbers<[1], [0], [0], [1], [0, 0, 1, 1], [], []>} : vector<32x8xf32>, vector<8x256xf32>, vector<32x256xf32> -> vector<32x256xf32>
    %139 = arith.addf %130, %138 : vector<32x256xf32>
    %c0_123 = arith.constant 0 : index
    %c0_124 = arith.constant 0 : index
    %140 = vector.load %arg11[%c0_123, %c0_124] : memref<8x512xf32, #tpu.memory_space<vmem>>, vector<8x256xf32>
    %c4_125 = arith.constant 4 : index
    %c0_126 = arith.constant 0 : index
    %c0_127 = arith.constant 0 : index
    %141 = vector.load %arg8[%c4_125, %c0_126, %c0_127] : memref<9x1x256xf32, #tpu.memory_space<vmem>>, vector<1x1x256xf32>
    %142 = vector.shape_cast %141 : vector<1x1x256xf32> to vector<1x256xf32>
    %143 = vector.broadcast %142 : vector<1x256xf32> to vector<8x256xf32>
    %144 = arith.mulf %140, %143 : vector<8x256xf32>
    %c4_128 = arith.constant 4 : index
    %c0_129 = arith.constant 0 : index
    %c0_130 = arith.constant 0 : index
    %145 = vector.load %arg6[%c4_128, %c0_129, %c0_130] : memref<9x32x8xf32, #tpu.memory_space<vmem>>, vector<1x32x8xf32>
    %146 = vector.shape_cast %145 : vector<1x32x8xf32> to vector<32x8xf32>
    %cst_131 = arith.constant dense<0.000000e+00> : vector<32x256xf32>
    %147 = tpu.matmul %146, %144, %cst_131 {dimension_numbers = #tpu.dot_dimension_numbers<[1], [0], [0], [1], [0, 0, 1, 1], [], []>} : vector<32x8xf32>, vector<8x256xf32>, vector<32x256xf32> -> vector<32x256xf32>
    %148 = arith.addf %139, %147 : vector<32x256xf32>
    %c0_132 = arith.constant 0 : index
    %c1_133 = arith.constant 1 : index
    %149 = vector.load %arg11[%c0_132, %c1_133] : memref<8x512xf32, #tpu.memory_space<vmem>>, vector<8x256xf32>
    %c5_134 = arith.constant 5 : index
    %c0_135 = arith.constant 0 : index
    %c0_136 = arith.constant 0 : index
    %150 = vector.load %arg8[%c5_134, %c0_135, %c0_136] : memref<9x1x256xf32, #tpu.memory_space<vmem>>, vector<1x1x256xf32>
    %151 = vector.shape_cast %150 : vector<1x1x256xf32> to vector<1x256xf32>
    %152 = vector.broadcast %151 : vector<1x256xf32> to vector<8x256xf32>
    %153 = arith.mulf %149, %152 : vector<8x256xf32>
    %c5_137 = arith.constant 5 : index
    %c0_138 = arith.constant 0 : index
    %c0_139 = arith.constant 0 : index
    %154 = vector.load %arg6[%c5_137, %c0_138, %c0_139] : memref<9x32x8xf32, #tpu.memory_space<vmem>>, vector<1x32x8xf32>
    %155 = vector.shape_cast %154 : vector<1x32x8xf32> to vector<32x8xf32>
    %cst_140 = arith.constant dense<0.000000e+00> : vector<32x256xf32>
    %156 = tpu.matmul %155, %153, %cst_140 {dimension_numbers = #tpu.dot_dimension_numbers<[1], [0], [0], [1], [0, 0, 1, 1], [], []>} : vector<32x8xf32>, vector<8x256xf32>, vector<32x256xf32> -> vector<32x256xf32>
    %157 = arith.addf %148, %156 : vector<32x256xf32>
    %c0_141 = arith.constant 0 : index
    %c15_142 = arith.constant 15 : index
    %158 = vector.load %arg11[%c0_141, %c15_142] : memref<8x512xf32, #tpu.memory_space<vmem>>, vector<8x256xf32>
    %c6_143 = arith.constant 6 : index
    %c0_144 = arith.constant 0 : index
    %c0_145 = arith.constant 0 : index
    %159 = vector.load %arg8[%c6_143, %c0_144, %c0_145] : memref<9x1x256xf32, #tpu.memory_space<vmem>>, vector<1x1x256xf32>
    %160 = vector.shape_cast %159 : vector<1x1x256xf32> to vector<1x256xf32>
    %161 = vector.broadcast %160 : vector<1x256xf32> to vector<8x256xf32>
    %162 = arith.mulf %158, %161 : vector<8x256xf32>
    %c6_146 = arith.constant 6 : index
    %c0_147 = arith.constant 0 : index
    %c0_148 = arith.constant 0 : index
    %163 = vector.load %arg6[%c6_146, %c0_147, %c0_148] : memref<9x32x8xf32, #tpu.memory_space<vmem>>, vector<1x32x8xf32>
    %164 = vector.shape_cast %163 : vector<1x32x8xf32> to vector<32x8xf32>
    %cst_149 = arith.constant dense<0.000000e+00> : vector<32x256xf32>
    %165 = tpu.matmul %164, %162, %cst_149 {dimension_numbers = #tpu.dot_dimension_numbers<[1], [0], [0], [1], [0, 0, 1, 1], [], []>} : vector<32x8xf32>, vector<8x256xf32>, vector<32x256xf32> -> vector<32x256xf32>
    %166 = arith.addf %157, %165 : vector<32x256xf32>
    %c0_150 = arith.constant 0 : index
    %c16_151 = arith.constant 16 : index
    %167 = vector.load %arg11[%c0_150, %c16_151] : memref<8x512xf32, #tpu.memory_space<vmem>>, vector<8x256xf32>
    %c7_152 = arith.constant 7 : index
    %c0_153 = arith.constant 0 : index
    %c0_154 = arith.constant 0 : index
    %168 = vector.load %arg8[%c7_152, %c0_153, %c0_154] : memref<9x1x256xf32, #tpu.memory_space<vmem>>, vector<1x1x256xf32>
    %169 = vector.shape_cast %168 : vector<1x1x256xf32> to vector<1x256xf32>
    %170 = vector.broadcast %169 : vector<1x256xf32> to vector<8x256xf32>
    %171 = arith.mulf %167, %170 : vector<8x256xf32>
    %c7_155 = arith.constant 7 : index
    %c0_156 = arith.constant 0 : index
    %c0_157 = arith.constant 0 : index
    %172 = vector.load %arg6[%c7_155, %c0_156, %c0_157] : memref<9x32x8xf32, #tpu.memory_space<vmem>>, vector<1x32x8xf32>
    %173 = vector.shape_cast %172 : vector<1x32x8xf32> to vector<32x8xf32>
    %cst_158 = arith.constant dense<0.000000e+00> : vector<32x256xf32>
    %174 = tpu.matmul %173, %171, %cst_158 {dimension_numbers = #tpu.dot_dimension_numbers<[1], [0], [0], [1], [0, 0, 1, 1], [], []>} : vector<32x8xf32>, vector<8x256xf32>, vector<32x256xf32> -> vector<32x256xf32>
    %175 = arith.addf %166, %174 : vector<32x256xf32>
    %c0_159 = arith.constant 0 : index
    %c17_160 = arith.constant 17 : index
    %176 = vector.load %arg11[%c0_159, %c17_160] : memref<8x512xf32, #tpu.memory_space<vmem>>, vector<8x256xf32>
    %c8_161 = arith.constant 8 : index
    %c0_162 = arith.constant 0 : index
    %c0_163 = arith.constant 0 : index
    %177 = vector.load %arg8[%c8_161, %c0_162, %c0_163] : memref<9x1x256xf32, #tpu.memory_space<vmem>>, vector<1x1x256xf32>
    %178 = vector.shape_cast %177 : vector<1x1x256xf32> to vector<1x256xf32>
    %179 = vector.broadcast %178 : vector<1x256xf32> to vector<8x256xf32>
    %180 = arith.mulf %176, %179 : vector<8x256xf32>
    %c8_164 = arith.constant 8 : index
    %c0_165 = arith.constant 0 : index
    %c0_166 = arith.constant 0 : index
    %181 = vector.load %arg6[%c8_164, %c0_165, %c0_166] : memref<9x32x8xf32, #tpu.memory_space<vmem>>, vector<1x32x8xf32>
    %182 = vector.shape_cast %181 : vector<1x32x8xf32> to vector<32x8xf32>
    %cst_167 = arith.constant dense<0.000000e+00> : vector<32x256xf32>
    %183 = tpu.matmul %182, %180, %cst_167 {dimension_numbers = #tpu.dot_dimension_numbers<[1], [0], [0], [1], [0, 0, 1, 1], [], []>} : vector<32x8xf32>, vector<8x256xf32>, vector<32x256xf32> -> vector<32x256xf32>
    %184 = arith.addf %175, %183 : vector<32x256xf32>
    %cst_168 = arith.constant 0.000000e+00 : f32
    %185 = vector.broadcast %cst_168 : f32 to vector<32x256xf32>
    %186 = arith.maximumf %184, %185 : vector<32x256xf32>
    %c0_169 = arith.constant 0 : index
    %c0_170 = arith.constant 0 : index
    %c0_171 = arith.constant 0 : index
    %187 = vector.load %arg9[%c0_169, %c0_170, %c0_171] : memref<1x32x256xf32, #tpu.memory_space<vmem>>, vector<1x32x256xf32>
    %188 = vector.shape_cast %187 : vector<1x32x256xf32> to vector<32x256xf32>
    %189 = vector.shape_cast %186 : vector<32x256xf32> to vector<1x32x256xf32>
    tpu.vector_store %arg9[%c0_169, %c0_170, %c0_171], %189 {strides = array<i32>} : memref<1x32x256xf32, #tpu.memory_space<vmem>>, vector<1x32x256xf32>,
    return
  }
  func.func @transform_0(%arg0: i32) -> (i32, i32, i32) {
    %c0_i32 = arith.constant 0 : i32
    %c0_i32_0 = arith.constant 0 : i32
    %c0_i32_1 = arith.constant 0 : i32
    return %arg0, %c0_i32, %c0_i32_0 : i32, i32, i32
  }
  func.func @transform_1(%arg0: i32) -> (i32, i32) {
    %c0_i32 = arith.constant 0 : i32
    %c0_i32_0 = arith.constant 0 : i32
    %c0_i32_1 = arith.constant 0 : i32
    return %c0_i32, %c0_i32_0 : i32, i32
  }
  func.func @transform_2(%arg0: i32) -> (i32, i32) {
    %c0_i32 = arith.constant 0 : i32
    %c0_i32_0 = arith.constant 0 : i32
    %c0_i32_1 = arith.constant 0 : i32
    return %c0_i32, %c0_i32_0 : i32, i32
  }
  func.func @transform_3(%arg0: i32) -> (i32, i32, i32) {
    %c0_i32 = arith.constant 0 : i32
    %c0_i32_0 = arith.constant 0 : i32
    %c0_i32_1 = arith.constant 0 : i32
    %c0_i32_2 = arith.constant 0 : i32
    return %c0_i32, %c0_i32_0, %c0_i32_1 : i32, i32, i32
  }
  func.func @transform_4(%arg0: i32) -> (i32, i32) {
    %c0_i32 = arith.constant 0 : i32
    %c0_i32_0 = arith.constant 0 : i32
    %c0_i32_1 = arith.constant 0 : i32
    return %c0_i32, %c0_i32_0 : i32, i32
  }
  func.func @transform_5(%arg0: i32) -> (i32, i32, i32) {
    %c0_i32 = arith.constant 0 : i32
    %c0_i32_0 = arith.constant 0 : i32
    %c0_i32_1 = arith.constant 0 : i32
    %c0_i32_2 = arith.constant 0 : i32
    return %c0_i32, %c0_i32_0, %c0_i32_1 : i32, i32, i32
  }
  func.func @transform_6(%arg0: i32) -> (i32, i32) {
    %c0_i32 = arith.constant 0 : i32
    %c0_i32_0 = arith.constant 0 : i32
    %c0_i32_1 = arith.constant 0 : i32
    return %c0_i32, %c0_i32_0 : i32, i32
  }
  func.func @transform_7(%arg0: i32) -> (i32, i32, i32) {
    %c0_i32 = arith.constant 0 : i32
    %c0_i32_0 = arith.constant 0 : i32
    %c0_i32_1 = arith.constant 0 : i32
    %c0_i32_2 = arith.constant 0 : i32
    return %c0_i32, %c0_i32_0, %c0_i32_1 : i32, i32, i32
  }
  func.func @transform_8(%arg0: i32) -> (i32, i32, i32) {
    %c0_i32 = arith.constant 0 : i32
    %c0_i32_0 = arith.constant 0 : i32
    %c0_i32_1 = arith.constant 0 : i32
    return %arg0, %c0_i32, %c0_i32_0 : i32, i32, i32
  }
}

</mosaic_0001>

<bundles_post_ra>
// kernel: group_channel_attention_forward.1
= control target key start
LH: loop header
LB: loop body
LE: loop exit
PB: predicated region body
PF: predicated region fallthrough
CT: control target
= control target key end

     0   :  { %s3157_s27 = smov 0   ;;  %s4472_s0 = inlined_call_operand.vmem [shape: f32[2,32,256], index: 0, kind: input, shape index: {}]   ;;  %s4473_s1 = inlined_call_operand.vmem [shape: f32[32,32], index: 1, kind: input, shape index: {}]   ;;  %s4474_s2 = inlined_call_operand.vmem [shape: f32[32,1], index: 2, kind: input, shape index: {}]   ;;  %s4475_s3 = inlined_call_operand.vmem [shape: f32[9,8,32], index: 3, kind: input, shape index: {}]   ;;  %s4476_s4 = inlined_call_operand.vmem [shape: f32[8,1], index: 4, kind: input, shape index: {}]   ;;  %s4477_s5 = inlined_call_operand.vmem [shape: f32[9,32,8], index: 5, kind: input, shape index: {}]   ;;  %s4478_s6 = inlined_call_operand.vmem [shape: f32[32,1], index: 6, kind: input, shape index: {}]   ;;  %s4479_s7 = inlined_call_operand.vmem [shape: f32[9,1,256], index: 7, kind: input, shape index: {}]   ;;  %s4480_s8 = inlined_call_operand.vmem [shape: f32[2,32,256], index: 8, kind: output, shape index: {}]  }
   0x1 LB: > { %s2628_s28 = sadd.s32 4294967295, %s3101_s27   ;;  %p2632_p0 = scmp.ge.s32.totalorder %s3101_s27, 1  ;;  %s3101_s27 = sphi %s3157_s27, %s18_s27  }
   0x2   : > { %p262_p1 = scmp.lt.s32.totalorder %s3101_s27, 3 }
   0x4   : > { %p263_p2 = pnand %p2632_p0, %p262_p1 }
   0x6   : > { %266 = sbr.rel (%p263_p2) target bundleno = 1080 (0x438), region = 52 }
   0xb   : > { %v321_v0 = vld [vmem:[%s4474_s2 + $0x18] sm:$0xff]  ;;  %v2647_v1 = vld [vmem:[%s4479_s7 + $0x2] sm:$0x3]  ;;  %p296_p3 = scmp.lt.s32.totalorder %s2628_s28, 1  ;;  %v3103_v2 = vmov 0   ;;  %v319_v4 = vld [vmem:[%s4474_s2 + $0x8] sm:$0xff] }
   0xc   : > { %2812 = vset.pattern.permute.xlu0 %v3103_v2  ;;  %v583_v3 = vperm.slane %v2647_v1, 0  ;;  %2813 = vset.pattern.permute.xlu2 %v3103_v2  ;;  %s3104_s13 = smov 112   ;;  %v584_v8 = vperm.slane %v2647_v1, 1  ;;  %v320_v10 = vld [vmem:[%s4474_s2 + $0x10] sm:$0xff]  ;;  %v318_v11 = vld [vmem:[%s4474_s2] sm:$0xff]  ;;  %vm342_vm0 = vcmask 261120  }
   0xd   : > { %339 = vperm.xlu0 %2812, %v321_v0   ;;  %s4545_s28 = smov (!%p296_p3, %s2628_s28), 1  ;;  %329 = vperm.xlu2 %2813, %v319_v4   ;;  %v314_v16 = vld [vmem:[%s4473_s1] sm:$0xff]  ;;  %s3105_s30 = smov 113   ;;  %v315_v22 = vld [vmem:[%s4473_s1 + $0x8] sm:$0xff]  ;;  %v316_v27 = vld [vmem:[%s4473_s1 + $0x10] sm:$0xff]  ;;  %vm589_vm1 = vcmask 916480  }
   0xe   : > { %585 = vrot.lane.b32.xlu1 %v583_v3, %s3104_s13  ;;  %s2793_s14 = sshll.u32 %s4545_s28, 6  ;;  %v2651_v17 = vld [vmem:[%s4479_s7 + $0x4] sm:$0x3]  ;;  %v456_v18 = vld [vmem:[%s4479_s7] sm:$0x3]  ;;  %s3106_s9 = smov 111  }
   0xf   : > { %3094 = vset.pattern.permute.xlu1 %v3103_v2  ;;  %s300_s17 = scalar_lea.vmem %s4472_s0, %s2793_s14  ;;  %v709_v19 = vperm.slane %v2651_v17, 0  ;;  %v458_v20 = vperm.slane %v456_v18, 0  ;;  %v710_v21 = vperm.slane %v2651_v17, 1  ;;  %v2655_v23 = vld [vmem:[%s4479_s7 + $0x6] sm:$0x3]  ;;  %v459_v24 = vperm.slane %v456_v18, 1 }
  0x10   : > { %v312_v5 = vld [vmem:[%s300_s17 + $0x30] sm:$0xff]  ;;  %v313_v6 = vld [vmem:[%s300_s17 + $0x38] sm:$0xff]  ;;  %v310_v7 = vld [vmem:[%s300_s17 + $0x20] sm:$0xff]  ;;  %v836_v25 = vperm.slane %v2655_v23, 1  ;;  %v835_v26 = vperm.slane %v2655_v23, 0  ;;  %s3107_s16 = smov 127  }
  0x11   : > { %367 = vmatpush.msra.mxu0 %v312_v5  ;;  %396 = vmatpush.msra.mxu1 %v313_v6  ;;  %v311_v9 = vld [vmem:[%s300_s17 + $0x28] sm:$0xff]  ;;  %v308_v12 = vld [vmem:[%s300_s17 + $0x10] sm:$0xff]  ;;  %v309_v13 = vld [vmem:[%s300_s17 + $0x18] sm:$0xff]  ;;  %s3108_s23 = smov 1   ;;  %s3109_s24 = smov 15   ;;  %vm464_vm2 = vcmask 908288  }
  0x12   : > { %v306_v14 = vld [vmem:[%s300_s17] sm:$0xff]  ;;  %v307_v15 = vld [vmem:[%s300_s17 + $0x8] sm:$0xff]  ;;  %v317_v33 = vld [vmem:[%s4473_s1 + $0x18] sm:$0xff]  ;;  %s3110_s11 = smov 16   ;;  %s3111_s17 = smov 17   ;;  %vm715_vm3 = vcmask 924672  }
  0x13   : > { %368 = vmatpush.msra.mxu0 %v310_v7  ;;  %397 = vmatpush.msra.mxu1 %v311_v9  ;;  %v2663_v28 = vld [vmem:[%s4479_s7 + $0xa] sm:$0x3]  ;;  %v2667_v29 = vld [vmem:[%s4479_s7 + $0xc] sm:$0x3]  ;;  %v2671_v34 = vld [vmem:[%s4479_s7 + $0xe] sm:$0x3] }
  0x14   : > { %v1043_v30 = vperm.slane %v2663_v28, 0  ;;  %v1167_v31 = vperm.slane %v2667_v29, 0  ;;  %v1044_v32 = vperm.slane %v2663_v28, 1  ;;  %v1168_v35 = vperm.slane %v2667_v29, 1  ;;  %v2675_v38 = vld [vmem:[%s4479_s7 + $0x10] sm:$0x3] }
  0x15   : > { %334 = vperm.xlu0 %2812, %v320_v10   ;;  %324 = vperm.xlu2 %2813, %v318_v11   ;;  %v1292_v36 = vperm.slane %v2671_v34, 1  ;;  %v1291_v37 = vperm.slane %v2671_v34, 0  ;;  %v1415_v39 = vperm.slane %v2675_v38, 0  ;;  %v1416_v40 = vperm.slane %v2675_v38, 1 }
  0x16   : > { %587 = vrot.lane.b32.xlu1 %v584_v8, %s3104_s13  ;;  %369 = vmatpush.msra.mxu0 %v308_v12  ;;  %vm841_vm4 = vcmask 1039360   ;;  %vm770_vm5 = vcmask 121856   ;;  %vm896_vm6 = vcmask 7168   ;;  %vm644_vm7 = vcmask 130048  }
  0x17   : > { %398 = vmatpush.msra.mxu1 %v309_v13  ;;  %vm518_vm8 = vcmask 138240   ;;  %vm1605_vm9 = vcmask 64512  }
  0x18   : > { %370 = vmatpush.msra.mxu0 %v306_v14 }
  0x19   : > { %399 = vmatpush.msra.mxu1 %v307_v15  ;;  %2637 = vmatmul.msk.f32.vlgmr.msra.gmra.mxu0 %vm342_vm0, %v314_v16 }
  0x1a   : > { %2641 = vmatmul.msk.f32.vlgmr.msra.gmra.mxu1 %vm342_vm0, %v314_v16 }
  0x1d   : > { %711 = vrot.lane.b32.xlu0 %v709_v19, %s3105_s30  ;;  %460 = vrot.lane.b32.xlu2 %v458_v20, %s3106_s9 }
  0x1e   : > { %713 = vrot.lane.b32.xlu1 %v710_v21, %s3105_s30 }
  0x21   : > { %2638 = vmatmul.msk.f32.gmra.mxu0 %vm342_vm0, %v315_v22 }
  0x22   : > { %2642 = vmatmul.msk.f32.gmra.mxu1 %vm342_vm0, %v315_v22 }
  0x25   : > { %462 = vrot.lane.b32.xlu0 %v459_v24, %s3106_s9  ;;  %839 = vrot.lane.b32.xlu2 %v836_v25, %s3107_s16 }
  0x26   : > { %837 = vrot.lane.b32.xlu1 %v835_v26, %s3107_s16 }
  0x29   : > { %2639 = vmatmul.msk.f32.gmra.mxu0 %vm342_vm0, %v316_v27 }
  0x2a   : > { %2643 = vmatmul.msk.f32.gmra.mxu1 %vm342_vm0, %v316_v27 }
  0x2d   : > { %1045 = vrot.lane.b32.xlu0 %v1043_v30, %s3108_s23  ;;  %1169 = vrot.lane.b32.xlu2 %v1167_v31, %s3109_s24 }
  0x2e   : > { %1047 = vrot.lane.b32.xlu1 %v1044_v32, %s3108_s23 }
  0x31   : > { %2640 = vmatmul.msk.f32.gmra.mxu0 %vm342_vm0, %v317_v33 }
  0x32   : > { %2644 = vmatmul.msk.f32.gmra.mxu1 %vm342_vm0, %v317_v33 }
  0x35   : > { %1171 = vrot.lane.b32.xlu0 %v1168_v35, %s3109_s24  ;;  %1295 = vrot.lane.b32.xlu2 %v1292_v36, %s3110_s11 }
  0x36   : > { %1293 = vrot.lane.b32.xlu1 %v1291_v37, %s3110_s11 }
  0x3d   : > { %1417 = vrot.lane.b32.xlu0 %v1415_v39, %s3111_s17 }
  0x3e   : > { %1419 = vrot.lane.b32.xlu1 %v1416_v40, %s3111_s17 }
  0x67   : > { %v330_v41 = vpop.permute.xlu2 %329 }
  0x6f   : > { %v325_v44 = vpop.permute.xlu2 %324 }
  0x77   : > { %v3253_v48 = vpop.permute.xlu2 %460 }
  0x7f   : > { %v3245_v42 = vpop.permute.xlu0 %339  ;;  %v3268_v58 = vpop.permute.xlu2 %839 }
  0x80   : > { %v3247_v43 = vpop.permute.xlu1 %585 }
  0x87   : > { %v335_v45 = vpop.permute.xlu0 %334  ;;  %v3306_v15 = vpop.permute.xlu2 %1169 }
  0x88   : > { %v3249_v46 = vpop.permute.xlu1 %587 }
  0x89   : > { %v3262_v54 = vsel %vm589_vm1, %v3247_v43, %v3249_v46 }
  0x8f   : > { %v3251_v47 = vpop.permute.xlu0 %711 }
  0x90   : > { %v3255_v49 = vpop.permute.xlu1 %713 }
  0x91   : > { %v3292_v8 = vsel %vm715_vm3, %v3251_v47, %v3255_v49 }
  0x96   : > { %v372_v50 = vpop.f32.mrf.mxu0 }
  0x97   : > { %v373_v51 = vadd.f32 %v372_v50, %v325_v44  ;;  %v401_v52 = vpop.f32.mrf.mxu1  ;;  %v3257_v53 = vpop.permute.xlu0 %462 }
  0x98   : > { %v402_v55 = vadd.f32 %v401_v52, %v325_v44  ;;  %v3264_v56 = vpop.permute.xlu1 %837  ;;  %v3275_v60 = vsel %vm464_vm2, %v3253_v48, %v3257_v53 }
  0x99   : > { %v3266_v57 = vmax.f32 %v373_v51, 0.0  ;;  %v3313_v17 = vsel %vm841_vm4, %v3264_v56, %v3268_v58 }
  0x9a   : > { %v3270_v59 = vmax.f32 %v402_v55, 0.0 }
  0x9b   : > { %v595_v61 = vmul.f32 %v3262_v54, %v3266_v57  ;;  %v470_v62 = vmul.f32 %v3275_v60, %v3266_v57  ;;  %v721_v12 = vmul.f32 %v3292_v8, %v3266_v57  ;;  %v847_v28 = vmul.f32 %v3313_v17, %v3266_v57 }
  0x9c   : > { %4497 = vst [vmem:[#allocation4_spill] sm:$0xff] %v3270_v59  ;;  %v596_v63 = vmul.f32 %v3249_v46, %v3270_v59  ;;  %v471_v0 = vmul.f32 %v3257_v53, %v3270_v59  ;;  %v722_v13 = vmul.f32 %v3255_v49, %v3270_v59  ;;  %v848_v29 = vmul.f32 %v3268_v58, %v3270_v59 }
  0x9d   : > { %v594_v36 = vmul.f32 %v3247_v43, %v3270_v59  ;;  %v3349_v37 = vmul.f32 %v3251_v47, %v3270_v59  ;;  %v3353_v38 = vmul.f32 %v3264_v56, %v3270_v59 }
  0x9e   : > { %v375_v1 = vpop.f32.mrf.mxu0  ;;  %v2814_v2 = vpack.i.bf16 %v596_v63, %v595_v61  ;;  %v2824_v3 = vpack.i.bf16 %v471_v0, %v470_v62  ;;  %v2819_v20 = vpack.i.bf16 %v722_v13, %v721_v12  ;;  %v2829_v40 = vpack.i.bf16 %v848_v29, %v847_v28 }
  0x9f   : > { %v376_v4 = vadd.f32 %v375_v1, %v330_v41  ;;  %v404_v5 = vpop.f32.mrf.mxu1  ;;  %v3285_v6 = vpop.permute.xlu0 %1045  ;;  %v3396_v12 = vmul.f32 %v3253_v48, %v3270_v59 }
  0xa0   : > { %v405_v7 = vadd.f32 %v404_v5, %v330_v41  ;;  %2815 = vrot.lane.b32.xlu1 %v2814_v2, %s3110_s11  ;;  %2825 = vrot.lane.b32.xlu0 %v2824_v3, %s3111_s17  ;;  %v3298_v11 = vpop.permute.xlu1 %1047 }
  0xa1   : > { %v3294_v9 = vmax.f32 %v376_v4, 0.0  ;;  %v3335_v30 = vsel %vm896_vm6, %v3285_v6, %v3298_v11  ;;  %v1055_v44 = vmul.f32 %v3298_v11, %v3266_v57 }
  0xa2   : > { %v3296_v10 = vmax.f32 %v405_v7, 0.0  ;;  %v1054_v41 = vmul.f32 %v3335_v30, %v3270_v59 }
  0xa3   : > { %v598_v14 = vmul.f32 %v3262_v54, %v3294_v9  ;;  %v724_v32 = vmul.f32 %v3292_v8, %v3294_v9  ;;  %v473_v61 = vmul.f32 %v3275_v60, %v3294_v9  ;;  %v3379_v2 = vmul.f32 %v3313_v17, %v3294_v9 }
  0xa4   : > { %v597_v16 = vmul.f32 %v3247_v43, %v3296_v10  ;;  %v723_v31 = vmul.f32 %v3251_v47, %v3296_v10  ;;  %v599_v52 = vmul.f32 %v3249_v46, %v3296_v10  ;;  %v472_v55 = vmul.f32 %v3253_v48, %v3296_v10 }
  0xa5   : > { %v725_v0 = vmul.f32 %v3255_v49, %v3296_v10  ;;  %v3375_v1 = vmul.f32 %v3268_v58, %v3296_v10  ;;  %v3386_v4 = vmul.f32 %v3264_v56, %v3296_v10 }
  0xa6   : > { %v378_v18 = vpop.f32.mrf.mxu0  ;;  %v2844_v19 = vpack.i.bf16 %v598_v14, %v597_v16  ;;  %v2854_v51 = vpack.i.bf16 %v724_v32, %v723_v31  ;;  %v2849_v16 = vpack.i.bf16 %v594_v36, %v599_v52  ;;  %v3439_v32 = vmul.f32 %v3257_v53, %v3296_v10 }
  0xa7   : > { %v407_v21 = vpop.f32.mrf.mxu1  ;;  %v3315_v22 = vpop.permute.xlu0 %1171  ;;  %v379_v23 = vadd.f32 %v378_v18, %v335_v45  ;;  %v2864_v18 = vpack.i.bf16 %v473_v61, %v472_v55 }
  0xa8   : > { %v3320_v24 = vsel %vm770_vm5, %v3306_v15, %v3315_v22  ;;  %2845 = vrot.lane.b32.xlu2 %v2844_v19, %s3110_s11  ;;  %2820 = vrot.lane.b32.xlu1 %v2819_v20, %s3109_s24  ;;  %v1179_v25 = vmul.f32 %v3315_v22, %v3266_v57  ;;  %v408_v26 = vadd.f32 %v407_v21, %v335_v45  ;;  %v3343_v35 = vpop.permute.xlu1 %1293  ;;  %v3362_v45 = vpop.permute.xlu2 %1295 }
  0xa9   : > { %v1178_v27 = vmul.f32 %v3320_v24, %v3270_v59  ;;  %v3341_v34 = vmax.f32 %v379_v23, 0.0  ;;  %v3404_v13 = vmul.f32 %v3362_v45, %v3266_v57  ;;  %v2834_v19 = vpack.i.bf16 %v1055_v44, %v1054_v41 }
  0xaa   : > { %v3355_v39 = vmax.f32 %v408_v26, 0.0  ;;  %v2859_v20 = vpack.i.bf16 %v3349_v37, %v725_v0  ;;  %v2879_v26 = vpack.i.bf16 %v3353_v38, %v3375_v1  ;;  %v3434_v31 = vsel %vm644_vm7, %v3343_v35, %v3362_v45 }
  0xab   : > { %v2839_v33 = vpack.i.bf16 %v1179_v25, %v1178_v27  ;;  %v3390_v5 = vmul.f32 %v3275_v60, %v3341_v34  ;;  %v2874_v27 = vpack.i.bf16 %v3379_v2, %v3386_v4  ;;  %v3473_v52 = vmul.f32 %v3343_v35, %v3294_v9 }
  0xac   : > { %v3483_v61 = vmul.f32 %v3251_v47, %v3355_v39  ;;  %v3495_v0 = vmul.f32 %v3264_v56, %v3355_v39  ;;  %v3513_v4 = vmul.f32 %v3253_v48, %v3355_v39  ;;  %v3531_v2 = vmul.f32 %v3434_v31, %v3270_v59 }
  0xad   : > { %2840 = vrot.lane.b32.xlu0 %v2839_v33, %s3105_s30  ;;  %v3443_v33 = vmul.f32 %v3247_v43, %v3355_v39  ;;  %v3570_v41 = vmul.f32 %v3306_v15, %v3341_v34 }
  0xae   : > { %v381_v50 = vpop.f32.mrf.mxu0  ;;  %4501 = vst [vmem:[#allocation8_spill] sm:$0xff] %v3531_v2 }
  0xaf   : > { %v382_v62 = vadd.f32 %v381_v50, %v3245_v42  ;;  %v410_v63 = vpop.f32.mrf.mxu1  ;;  %v3449_v37 = vpop.permute.xlu0 %1417  ;;  %v3465_v50 = vmul.f32 %v3285_v6, %v3294_v9 }
  0xb0   : > { %v411_v3 = vadd.f32 %v410_v63, %v3245_v42  ;;  %2855 = vrot.lane.b32.xlu2 %v2854_v51, %s3109_s24  ;;  %2830 = vrot.lane.b32.xlu1 %v2829_v40, %s3108_s23  ;;  %v3400_v42 = vmul.f32 %v3257_v53, %v3355_v39  ;;  %v1420_v38 = vpop.permute.xlu1 %1419  ;;  %v3469_v51 = vmul.f32 %v3335_v30, %v3296_v10 }
  0xb1   : > { %v3392_v7 = vmax.f32 %v382_v62, 0.0  ;;  %v3491_v63 = vsel %vm518_vm8, %v3449_v37, %v1420_v38  ;;  %v3580_v40 = vmul.f32 %v3343_v35, %v3341_v34 }
  0xb2   : > { %v3406_v14 = vmax.f32 %v411_v3, 0.0  ;;  %4500 = vst [vmem:[#allocation7_spill] sm:$0xff] %v3491_v63  ;;  %v3592_v21 = vmul.f32 %v3491_v63, %v3355_v39 }
  0xb3   : > { %4498 = vst [vmem:[#allocation5_spill] sm:$0xff] %v3392_v7  ;;  %v3413_v23 = vmul.f32 %v3262_v54, %v3392_v7  ;;  %v3417_v25 = vmul.f32 %v3292_v8, %v3392_v7  ;;  %v3509_v3 = vmul.f32 %v3313_v17, %v3392_v7  ;;  %v3576_v2 = vmul.f32 %v3315_v22, %v3392_v7 }
  0xb4   : > { %4499 = vst [vmem:[#allocation6_spill] sm:$0xff] %v3406_v14  ;;  %v3425_v28 = vmul.f32 %v3247_v43, %v3406_v14  ;;  %v3429_v29 = vmul.f32 %v3251_v47, %v3406_v14  ;;  %v3447_v36 = vmul.f32 %v3249_v46, %v3406_v14  ;;  %v3457_v44 = vmul.f32 %v3253_v48, %v3406_v14 }
  0xb5   : > { %2850 = vrot.lane.b32.xlu0 %v2849_v16, %s3110_s11  ;;  %v3461_v43 = vmul.f32 %v3275_v60, %v3392_v7  ;;  %v3487_v62 = vmul.f32 %v3255_v49, %v3406_v14  ;;  %v3499_v1 = vmul.f32 %v3268_v58, %v3406_v14  ;;  %v3503_v47 = vmul.f32 %v3264_v56, %v3406_v14 }
  0xb6   : > { %v3517_v16 = vmul.f32 %v3257_v53, %v3406_v14  ;;  %v3523_v56 = vmul.f32 %v3285_v6, %v3392_v7  ;;  %v3543_v60 = vmul.f32 %v3298_v11, %v3392_v7  ;;  %v3552_v48 = vmul.f32 %v3306_v15, %v3392_v7 }
  0xb7   : > { %v3556_v53 = vmul.f32 %v3320_v24, %v3406_v14  ;;  %v3566_v55 = vmul.f32 %v3434_v31, %v3406_v14 }
  0xb8   : > { %2865 = vrot.lane.b32.xlu2 %v2864_v18, %s3111_s17  ;;  %2835 = vrot.lane.b32.xlu1 %v2834_v19, %s3107_s16  ;;  %v3527_v19 = vmul.f32 %v3335_v30, %v3406_v14  ;;  %v3539_v18 = vmul.f32 %v3285_v6, %v3341_v34  ;;  %4503 = vst [vmem:[#allocation10_spill] sm:$0xff] %v3543_v60 }
  0xb9   : > { %4504 = vst [vmem:[#allocation11_spill] sm:$0xff] %v3552_v48  ;;  %v3584_v60 = vmul.f32 %v3362_v45, %v3392_v7  ;;  %v3595_v48 = vmul.f32 %v1420_v38, %v3341_v34  ;;  %v2869_v14 = vpack.i.bf16 %v3396_v12, %v3439_v32  ;;  %v3628_v12 = vmul.f32 %v1420_v38, %v3294_v9 }
  0xba   : > { %4502 = vst [vmem:[#allocation9_spill] sm:$0xff] %v3539_v18  ;;  %v3632_v32 = vmul.f32 %v3449_v37, %v3294_v9 }
  0xbb   : > { %4505 = vst [vmem:[#allocation12_spill] sm:$0xff] %v3556_v53  ;;  %v3616_v53 = vmul.f32 %v3491_v63, %v3270_v59  ;;  %v1181_v59 = vmul.f32 %v3320_v24, %v3296_v10 }
  0xbc   : > { %4507 = vst [vmem:[#allocation14_spill] sm:$0xff] %v3566_v55  ;;  %v3636_v55 = vmul.f32 %v3491_v63, %v3296_v10  ;;  %v1058_v63 = vmul.f32 %v3298_v11, %v3294_v9 }
  0xbd   : > { %2860 = vrot.lane.b32.xlu0 %v2859_v20, %s3109_s24  ;;  %v3562_v20 = vmul.f32 %v3343_v35, %v3392_v7  ;;  %4508 = vst [vmem:[#allocation15_spill] sm:$0xff] %v3584_v60  ;;  %v3621_v60 = vmul.f32 %v1420_v38, %v3266_v57 }
  0xbf   : > { %4506 = vst [vmem:[#allocation13_spill] sm:$0xff] %v3562_v20  ;;  %v1305_v20 = vmul.f32 %v3434_v31, %v3296_v10  ;;  %v3049_v18 = vpack.i.bf16 %v3621_v60, %v3616_v53 }
  0xc0   : > { %2880 = vrot.lane.b32.xlu2 %v2879_v26, %s3108_s23  ;;  %2875 = vrot.lane.b32.xlu1 %v2874_v27, %s3108_s23  ;;  %v3603_v26 = vmul.f32 %v3449_v37, %v3341_v34  ;;  %v3606_v27 = vmul.f32 %v1420_v38, %v3392_v7  ;;  %v3625_v7 = vmul.f32 %v3449_v37, %v3266_v57 }
  0xc1   : > { %v2884_v38 = vpack.i.bf16 %v3469_v51, %v3465_v50  ;;  %v601_v50 = vmul.f32 %v3262_v54, %v3341_v34  ;;  %v602_v51 = vmul.f32 %v3249_v46, %v3355_v39  ;;  %v1177_v54 = vmul.f32 %v3306_v15, %v3266_v57 }
  0xc2   : > { %4509 = vst [vmem:[#allocation16_spill] sm:$0xff] %v3603_v26  ;;  %v3034_v26 = vpack.i.bf16 %v3636_v55, %v3632_v32  ;;  %v1301_v46 = vmul.f32 %v3343_v35, %v3266_v57 }
  0xc3   : > { %4510 = vst [vmem:[#allocation17_spill] sm:$0xff] %v3606_v27  ;;  %v2904_v27 = vpack.i.bf16 %v1305_v20, %v3473_v52  ;;  %v1180_v20 = vmul.f32 %v3306_v15, %v3294_v9  ;;  %v853_v15 = vmul.f32 %v3313_v17, %v3341_v34  ;;  %v1061_v17 = vmul.f32 %v3298_v11, %v3341_v34 }
  0xc4   : > { %v4514_v11 = vpack.i.bf16 %v3443_v33, %v3447_v36  ;;  %v4520_v33 = vpack.i.bf16 %v3527_v19, %v3523_v56  ;;  %v4521_v36 = vld [vmem:[#allocation8_spill] sm:$0xff] }
  0xc5   : > { %2870 = vrot.lane.b32.xlu0 %v2869_v14, %s3111_s17  ;;  %v1053_v14 = vmul.f32 %v3285_v6, %v3266_v57  ;;  %v1182_v6 = vmul.f32 %v3315_v22, %v3294_v9 }
  0xc7   : > { %v2889_v52 = vpack.i.bf16 %v1053_v14, %v1058_v63  ;;  %v727_v63 = vmul.f32 %v3292_v8, %v3341_v34  ;;  %v2899_v14 = vpack.i.bf16 %v1177_v54, %v1182_v6  ;;  %v854_v8 = vmul.f32 %v3268_v58, %v3355_v39  ;;  %v4533_v6 = vld [vmem:[#allocation15_spill] sm:$0xff] }
  0xc8   : > { %2885 = vrot.lane.b32.xlu2 %v2884_v38, %s3107_s16  ;;  %2905 = vrot.lane.b32.xlu1 %v2904_v27, %s3104_s13  ;;  %v2894_v38 = vpack.i.bf16 %v1181_v59, %v1180_v20  ;;  %v2914_v27 = vpack.i.bf16 %v602_v51, %v601_v50  ;;  %v728_v59 = vmul.f32 %v3255_v49, %v3355_v39 }
  0xc9   : > { %v1306_v50 = vmul.f32 %v3362_v45, %v3294_v9  ;;  %v4511_v49 = vpack.i.bf16 %v3400_v42, %v3390_v5  ;;  %v2929_v35 = vpack.i.bf16 %v854_v8, %v853_v15  ;;  %v1184_v20 = vmul.f32 %v3320_v24, %v3355_v39 }
  0xca   : > { %v1060_v58 = vmul.f32 %v3335_v30, %v3355_v39  ;;  %v1308_v42 = vmul.f32 %v3434_v31, %v3355_v39  ;;  %v1309_v30 = vmul.f32 %v3362_v45, %v3341_v34  ;;  %v4517_v45 = vpack.i.bf16 %v3495_v0, %v3499_v1  ;;  %v4526_v1 = vld [vmem:[#allocation12_spill] sm:$0xff]  ;;  %v4540_v15 = vld [vmem:[#allocation17_spill] sm:$0xff] }
  0xcb   : > { %v2909_v51 = vpack.i.bf16 %v1301_v46, %v1306_v50  ;;  %v4519_v31 = vpack.i.bf16 %v3513_v4, %v3517_v16  ;;  %v4529_v4 = vld [vmem:[#allocation14_spill] sm:$0xff]  ;;  %v4530_v16 = vld [vmem:[#allocation13_spill] sm:$0xff]  ;;  %v4534_v54 = vpack.i.bf16 %v3580_v40, %v4533_v6  ;;  %v4535_v46 = vpack.i.bf16 %v3595_v48, %v3592_v21 }
  0xcc   : > { %v2934_v24 = vpack.i.bf16 %v1061_v17, %v1060_v58  ;;  %v4531_v56 = vpack.i.bf16 %v4529_v4, %v4530_v16  ;;  %v4542_v48 = vpack.i.bf16 %v3625_v7, %v3628_v12  ;;  %v437_v7 = vld [vmem:[%s4476_s4] sm:$0xff] }
  0xcd   : > { %2890 = vrot.lane.b32.xlu0 %v2889_v52, %s3107_s16  ;;  %v2919_v52 = vpack.i.bf16 %v728_v59, %v727_v63 }
  0xd0   : > { %2895 = vrot.lane.b32.xlu2 %v2894_v38, %s3105_s30  ;;  %2915 = vrot.lane.b32.xlu1 %v2914_v27, %s3110_s11  ;;  %v1185_v38 = vmul.f32 %v3315_v22, %v3341_v34  ;;  %v4512_v27 = vpack.i.bf16 %v3413_v23, %v3425_v28  ;;  %v4513_v22 = vpack.i.bf16 %v3417_v25, %v3429_v29 }
  0xd1   : > { %v2944_v23 = vpack.i.bf16 %v1309_v30, %v1308_v42  ;;  %v4515_v28 = vpack.i.bf16 %v3461_v43, %v3457_v44  ;;  %v4516_v25 = vpack.i.bf16 %v3483_v61, %v3487_v62  ;;  %v4518_v29 = vpack.i.bf16 %v3509_v3, %v3503_v47  ;;  %v4523_v61 = vld [vmem:[#allocation9_spill] sm:$0xff]  ;;  %v4524_v62 = vld [vmem:[#allocation10_spill] sm:$0xff]  ;;  %v4527_v47 = vld [vmem:[#allocation11_spill] sm:$0xff] }
  0xd2   : > { %v2939_v5 = vpack.i.bf16 %v1185_v38, %v1184_v20  ;;  %v4522_v44 = vpack.i.bf16 %v3404_v13, %v4521_v36  ;;  %v4525_v0 = vpack.i.bf16 %v4523_v61, %v4524_v62  ;;  %v4528_v3 = vpack.i.bf16 %v4526_v1, %v4527_v47 }
  0xd3   : > { %v4532_v13 = vpack.i.bf16 %v3570_v41, %v3576_v2  ;;  %v4538_v41 = vld [vmem:[#allocation7_spill] sm:$0xff] }
  0xd5   : > { %2900 = vrot.lane.b32.xlu0 %v2899_v14, %s3105_s30  ;;  %v4536_v14 = vld [vmem:[#allocation5_spill] sm:$0xff] }
  0xd6   : > { %v1434_v50 = vmul.f32 %v3449_v37, %v4536_v14 }
  0xd8   : > { %2910 = vrot.lane.b32.xlu2 %v2909_v51, %s3104_s13  ;;  %2920 = vrot.lane.b32.xlu1 %v2919_v52, %s3109_s24  ;;  %v4537_v51 = vld [vmem:[#allocation6_spill] sm:$0xff]  ;;  %v4539_v52 = vld [vmem:[#allocation16_spill] sm:$0xff] }
  0xd9   : > { %v1435_v2 = vmul.f32 %v4538_v41, %v4537_v51  ;;  %v4541_v40 = vpack.i.bf16 %v4539_v52, %v4540_v15 }
  0xdb   : > { %v3029_v8 = vpack.i.bf16 %v1435_v2, %v1434_v50 }
  0xdd   : > { %2925 = vrot.lane.b32.xlu0 %v4511_v49, %s3111_s17 }
  0xe0   : > { %2950 = vrot.lane.b32.xlu2 %v4512_v27, %s3110_s11  ;;  %2930 = vrot.lane.b32.xlu1 %v2929_v35, %s3108_s23 }
  0xe5   : > { %2940 = vrot.lane.b32.xlu0 %v2939_v5, %s3105_s30 }
  0xe8   : > { %2960 = vrot.lane.b32.xlu2 %v4513_v22, %s3109_s24  ;;  %2935 = vrot.lane.b32.xlu1 %v2934_v24, %s3107_s16 }
  0xed   : > { %2955 = vrot.lane.b32.xlu0 %v4514_v11, %s3110_s11 }
  0xf0   : > { %2970 = vrot.lane.b32.xlu2 %v4515_v28, %s3111_s17  ;;  %2945 = vrot.lane.b32.xlu1 %v2944_v23, %s3104_s13 }
  0xf5   : > { %2965 = vrot.lane.b32.xlu0 %v4516_v25, %s3109_s24 }
  0xf8   : > { %2990 = vrot.lane.b32.xlu2 %v4517_v45, %s3108_s23  ;;  %2980 = vrot.lane.b32.xlu1 %v4518_v29, %s3108_s23 }
  0xfd   : > { %2975 = vrot.lane.b32.xlu0 %v4519_v31, %s3111_s17 }
 0x100   : > { %2995 = vrot.lane.b32.xlu2 %v4520_v33, %s3107_s16  ;;  %2985 = vrot.lane.b32.xlu1 %v4522_v44, %s3104_s13 }
 0x102   : > { %v3744_v43 = vpop.permute.xlu2 %2845 }
 0x103   : > { %v2848_v50 = vunpack.i.h.bf16 %v3744_v43  ;;  %v2847_v41 = vunpack.i.l.bf16 %v3744_v43 }
 0x105   : > { %3000 = vrot.lane.b32.xlu0 %v4525_v0, %s3107_s16 }
 0x108   : > { %3005 = vrot.lane.b32.xlu2 %v4528_v3, %s3105_s30  ;;  %3015 = vrot.lane.b32.xlu1 %v4531_v56, %s3104_s13 }
 0x10a   : > { %v3758_v19 = vpop.permute.xlu2 %2855 }
 0x10d   : > { %3010 = vrot.lane.b32.xlu0 %v4532_v13, %s3105_s30 }
 0x110   : > { %3025 = vrot.lane.b32.xlu2 %v4534_v54, %s3104_s13  ;;  %3020 = vrot.lane.b32.xlu1 %v4535_v46, %s3106_s9 }
 0x112   : > { %v3772_v63 = vpop.permute.xlu2 %2865  ;;  %v3774_v59 = vpop.permute.xlu1 %2815 }
 0x113   : > { %v3784_v49 = vpop.permute.xlu0 %2825  ;;  %v2817_v43 = vunpack.i.l.bf16 %v3774_v59 }
 0x115   : > { %3040 = vrot.lane.b32.xlu0 %v4541_v40, %s3106_s9 }
 0x118   : > { %3030 = vrot.lane.b32.xlu2 %v3029_v8, %s3106_s9  ;;  %3050 = vrot.lane.b32.xlu1 %v3049_v18, %s3106_s9 }
 0x11a   : > { %v3791_v21 = vpop.permute.xlu2 %2880  ;;  %v3793_v37 = vpop.permute.xlu1 %2820 }
 0x11b   : > { %v2883_v18 = vunpack.i.h.bf16 %v3791_v21 }
 0x11d   : > { %3045 = vrot.lane.b32.xlu0 %v4542_v48, %s3106_s9 }
 0x11f   : > { %v3799_v35 = vpop.permute.xlu0 %2840 }
 0x120   : > { %3035 = vrot.lane.b32.xlu2 %v3034_v26, %s3106_s9  ;;  %v2842_v62 = vunpack.i.l.bf16 %v3799_v35 }
 0x122   : > { %v3805_v20 = vpop.permute.xlu2 %2885  ;;  %v3807_v60 = vpop.permute.xlu1 %2830 }
 0x123   : > { %v2832_v53 = vunpack.i.l.bf16 %v3807_v60 }
 0x125   : > { %v3817_v12 = vsel %vm896_vm6, %v2883_v18, %v2832_v53 }
 0x127   : > { %v3819_v38 = vpop.permute.xlu0 %2850 }
 0x128   : > { %440 = vperm.xlu2 %2813, %v437_v7   ;;  %v2853_v48 = vunpack.i.h.bf16 %v3819_v38  ;;  %v2852_v18 = vunpack.i.l.bf16 %v3819_v38  ;;  %v647_v38 = vsel %vm644_vm7, %v2847_v41, %v2848_v50 }
 0x12a   : > { %v3821_v55 = vpop.permute.xlu2 %2895  ;;  %v3823_v26 = vpop.permute.xlu1 %2835 }
 0x12b   : > { %v2898_v0 = vunpack.i.h.bf16 %v3821_v55 }
 0x12f   : > { %v3825_v32 = vpop.permute.xlu0 %2860 }
 0x132   : > { %v3827_v27 = vpop.permute.xlu2 %2910  ;;  %v3829_v58 = vpop.permute.xlu1 %2875 }
 0x133   : > { %v2912_v11 = vunpack.i.l.bf16 %v3827_v27 }
 0x137   : > { %v3831_v17 = vpop.permute.xlu0 %2870 }
 0x13a   : > { %v2951_v5 = vpop.permute.xlu2 %2950  ;;  %v3833_v24 = vpop.permute.xlu1 %2905 }
 0x13b   : > { %v2953_v22 = vunpack.i.h.bf16 %v2951_v5  ;;  %v2952_v42 = vunpack.i.l.bf16 %v2951_v5  ;;  %v2908_v30 = vunpack.i.h.bf16 %v3833_v24 }
 0x13d   : > { %v651_v23 = vsel %vm644_vm7, %v2952_v42, %v2953_v22  ;;  %v3843_v25 = vsel %vm589_vm1, %v2908_v30, %v2912_v11 }
 0x13e   : > { %676 = vmatpush.msra.mxu2 %v651_v23  ;;  %v2818_v23 = vunpack.i.h.bf16 %v3774_v59  ;;  %v648_v59 = vsel %vm644_vm7, %v2848_v50, %v2852_v18  ;;  %v2823_v50 = vunpack.i.h.bf16 %v3793_v37  ;;  %v2862_v18 = vunpack.i.l.bf16 %v3825_v32 }
 0x13f   : > { %v3838_v28 = vpop.permute.xlu0 %2890 }
 0x142   : > { %v3845_v45 = vpop.permute.xlu2 %2960  ;;  %v2916_v29 = vpop.permute.xlu1 %2915 }
 0x143   : > { %v2918_v52 = vunpack.i.h.bf16 %v2916_v29  ;;  %v2917_v15 = vunpack.i.l.bf16 %v2916_v29  ;;  %v2963_v29 = vunpack.i.h.bf16 %v3845_v45 }
 0x147   : > { %v2901_v31 = vpop.permute.xlu0 %2900 }
 0x148   : > { %v2903_v33 = vunpack.i.h.bf16 %v2901_v31  ;;  %v2902_v36 = vunpack.i.l.bf16 %v2901_v31  ;;  %v2962_v31 = vunpack.i.l.bf16 %v3845_v45  ;;  %v2857_v45 = vunpack.i.l.bf16 %v3758_v19 }
 0x14a   : > { %v3847_v44 = vpop.permute.xlu2 %2970  ;;  %v3849_v61 = vpop.permute.xlu1 %2920  ;;  %v3861_v4 = vsel %vm715_vm3, %v2903_v33, %v2842_v62  ;;  %v3866_v16 = vsel %vm715_vm3, %v2898_v0, %v2902_v36  ;;  %v650_v33 = vsel %vm644_vm7, %v2917_v15, %v2918_v52  ;;  %v645_v36 = vsel %vm644_vm7, %v2853_v48, %v2817_v43 }
 0x14b   : > { %v2973_v1 = vunpack.i.h.bf16 %v3847_v44  ;;  %v2972_v47 = vunpack.i.l.bf16 %v3847_v44  ;;  %v777_v41 = vsel %vm770_vm5, %v2962_v31, %v2963_v29  ;;  %v2923_v52 = vunpack.i.h.bf16 %v3849_v61 }
 0x14c   : > { %v2822_v48 = vunpack.i.l.bf16 %v3793_v37 }
 0x14d   : > { %v525_v3 = vsel %vm518_vm8, %v2972_v47, %v2973_v1  ;;  %v2858_v47 = vunpack.i.h.bf16 %v3758_v19  ;;  %v2863_v19 = vunpack.i.h.bf16 %v3825_v32  ;;  %v2652_v32 = vld [vmem:[%s4475_s3 + $0x10] sm:$0xff] }
 0x14e   : > { %550 = vmatpush.msrb.mxu0 %v525_v3 }
 0x14f   : > { %v3868_v56 = vpop.permute.xlu0 %2925  ;;  %v773_v37 = vsel %vm770_vm5, %v2857_v45, %v2858_v47  ;;  %v2878_v45 = vunpack.i.h.bf16 %v3829_v58 }
 0x152   : > { %v3870_v13 = vpop.permute.xlu1 %2930  ;;  %v3874_v54 = vpop.permute.xlu2 %2990 }
 0x157   : > { %v3872_v6 = vpop.permute.xlu0 %2940 }
 0x15a   : > { %v3876_v46 = vpop.permute.xlu1 %2935  ;;  %v3882_v7 = vpop.permute.xlu2 %2995 }
 0x15f   : > { %v2956_v2 = vpop.permute.xlu0 %2955 }
 0x160   : > { %v2958_v40 = vunpack.i.h.bf16 %v2956_v2  ;;  %v2957_v8 = vunpack.i.l.bf16 %v2956_v2  ;;  %v646_v2 = vsel %vm644_vm7, %v2817_v43, %v2818_v23 }
 0x162   : > { %v3884_v5 = vpop.permute.xlu1 %2945  ;;  %v649_v42 = vsel %vm644_vm7, %v2958_v40, %v2917_v15  ;;  %v652_v11 = vsel %vm644_vm7, %v2953_v22, %v2957_v8  ;;  %v2648_v22 = vld [vmem:[%s4475_s3 + $0x8] sm:$0xff]  ;;  %v2922_v15 = vunpack.i.l.bf16 %v3849_v61  ;;  %v3913_v23 = vpop.permute.xlu2 %3005 }
 0x163   : > { %677 = vmatpush.msra.mxu2 %v649_v42  ;;  %696 = vmatpush.msra.mxu3 %v652_v11 }
 0x165   : > { %678 = vmatpush.msra.mxu2 %v647_v38  ;;  %697 = vmatpush.msra.mxu3 %v650_v33  ;;  %v776_v38 = vsel %vm770_vm5, %v2922_v15, %v2923_v52  ;;  %v772_v33 = vsel %vm770_vm5, %v2822_v48, %v2823_v50 }
 0x167   : > { %v2966_v3 = vpop.permute.xlu0 %2965  ;;  %679 = vmatpush.msra.mxu2 %v645_v36  ;;  %698 = vmatpush.msra.mxu3 %v648_v59  ;;  %v771_v36 = vsel %vm770_vm5, %v2863_v19, %v2822_v48  ;;  %v774_v59 = vsel %vm770_vm5, %v2858_v47, %v2862_v18  ;;  %v2868_v47 = vunpack.i.h.bf16 %v3772_v63  ;;  %v2867_v48 = vunpack.i.l.bf16 %v3772_v63 }
 0x168   : > { %v2968_v40 = vunpack.i.h.bf16 %v2966_v3  ;;  %v2967_v8 = vunpack.i.l.bf16 %v2966_v3  ;;  %2649 = vmatmul.msk.f32.vlgmr.msra.gmra.mxu2 %vm342_vm0, %v2648_v22  ;;  %v2877_v3 = vunpack.i.l.bf16 %v3829_v58  ;;  %v2928_v58 = vunpack.i.h.bf16 %v3868_v56 }
 0x169   : > { %802 = vmatpush.msrb.mxu2 %v777_v41  ;;  %699 = vmatpush.msra.mxu3 %v646_v2  ;;  %v2927_v41 = vunpack.i.l.bf16 %v3868_v56  ;;  %v2992_v2 = vunpack.i.l.bf16 %v3874_v54  ;;  %v2882_v63 = vunpack.i.l.bf16 %v3791_v21  ;;  %v2873_v56 = vunpack.i.h.bf16 %v3831_v17  ;;  %v2659_v21 = vld [vmem:[%s4479_s7 + $0x8] sm:$0x3] }
 0x16a   : > { %v2981_v42 = vpop.permute.xlu1 %2980  ;;  %2650 = vmatmul.msk.f32.vlgmr.msra.gmra.mxu3 %vm342_vm0, %v2648_v22  ;;  %v775_v11 = vsel %vm770_vm5, %v2968_v40, %v2922_v15  ;;  %v778_v61 = vsel %vm770_vm5, %v2963_v29, %v2967_v8  ;;  %v2993_v29 = vunpack.i.h.bf16 %v3874_v54  ;;  %v2932_v22 = vunpack.i.l.bf16 %v3870_v13 }
 0x16b   : > { %803 = vmatpush.msrb.mxu2 %v775_v11  ;;  %822 = vmatpush.msrb.mxu3 %v778_v61  ;;  %v2983_v43 = vunpack.i.h.bf16 %v2981_v42  ;;  %v2982_v31 = vunpack.i.l.bf16 %v2981_v42  ;;  %v2933_v15 = vunpack.i.h.bf16 %v3870_v13  ;;  %v2872_v11 = vunpack.i.l.bf16 %v3831_v17 }
 0x16c   : > { %v901_v13 = vsel %vm896_vm6, %v2993_v29, %v2932_v22  ;;  %v2998_v61 = vunpack.i.h.bf16 %v3882_v7  ;;  %v2833_v17 = vunpack.i.h.bf16 %v3807_v60  ;;  %v481_v29 = vld [vmem:[%s4475_s3] sm:$0xff]  ;;  %v2938_v60 = vunpack.i.h.bf16 %v3876_v46 }
 0x16d   : > { %804 = vmatpush.msrb.mxu2 %v773_v37  ;;  %823 = vmatpush.msrb.mxu3 %v776_v38  ;;  %v903_v50 = vsel %vm896_vm6, %v2982_v31, %v2983_v43  ;;  %v904_v19 = vsel %vm896_vm6, %v2983_v43, %v2992_v2  ;;  %v2997_v31 = vunpack.i.l.bf16 %v3882_v7  ;;  %v899_v43 = vsel %vm896_vm6, %v2877_v3, %v2878_v45 }
 0x16e   : > { %v902_v44 = vsel %vm896_vm6, %v2932_v22, %v2933_v15  ;;  %v521_v37 = vsel %vm518_vm8, %v2867_v48, %v2868_v47  ;;  %v524_v7 = vsel %vm518_vm8, %v2927_v41, %v2928_v58  ;;  %v2828_v38 = vunpack.i.h.bf16 %v3784_v49 }
 0x16f   : > { %v2976_v52 = vpop.permute.xlu0 %2975  ;;  %805 = vmatpush.msrb.mxu2 %v771_v36  ;;  %824 = vmatpush.msrb.mxu3 %v774_v59  ;;  %v522_v59 = vsel %vm518_vm8, %v2868_v47, %v2872_v11  ;;  %v969_v3 = vperm.slane %v2659_v21, 0  ;;  %v898_v15 = vsel %vm896_vm6, %v2832_v53, %v2833_v17  ;;  %v2664_v17 = vld [vmem:[%s4475_s3 + $0x28] sm:$0xff] }
 0x170   : > { %v2978_v40 = vunpack.i.h.bf16 %v2976_v52  ;;  %v2977_v8 = vunpack.i.l.bf16 %v2976_v52  ;;  %2653 = vmatmul.msk.f32.vlgmr.msrb.gmra.mxu2 %vm342_vm0, %v2652_v32  ;;  %v970_v52 = vperm.slane %v2659_v21, 1 }
 0x171   : > { %928 = vmatpush.msra.mxu2 %v903_v50  ;;  %825 = vmatpush.msrb.mxu3 %v772_v33  ;;  %v900_v33 = vsel %vm896_vm6, %v2878_v45, %v2882_v63  ;;  %v1109_v45 = vsel %vm841_vm4, %v2997_v31, %v2998_v61  ;;  %v977_v48 = vmul.f32 %v969_v3, %v3341_v34  ;;  %v2892_v34 = vunpack.i.l.bf16 %v3838_v28 }
 0x172   : > { %v3935_v54 = vpop.permute.xlu1 %2985  ;;  %2654 = vmatmul.msk.f32.vlgmr.msrb.gmra.mxu3 %vm342_vm0, %v2652_v32  ;;  %v523_v18 = vsel %vm518_vm8, %v2978_v40, %v2927_v41  ;;  %v526_v42 = vsel %vm518_vm8, %v2973_v1, %v2977_v8  ;;  %v2827_v1 = vunpack.i.l.bf16 %v3784_v49  ;;  %v3959_v32 = vpop.permute.xlu2 %3025  ;;  %v2656_v49 = vld [vmem:[%s4475_s3 + $0x18] sm:$0xff]  ;;  %v979_v40 = vmul.f32 %v969_v3, %v4536_v14 }
 0x173   : > { %929 = vmatpush.msra.mxu2 %v901_v13  ;;  %948 = vmatpush.msra.mxu3 %v904_v19  ;;  %v2888_v8 = vunpack.i.h.bf16 %v3805_v20  ;;  %v980_v58 = vmul.f32 %v970_v52, %v4537_v51  ;;  %v2887_v13 = vunpack.i.l.bf16 %v3805_v20  ;;  %v2893_v19 = vunpack.i.h.bf16 %v3838_v28 }
 0x174   : > { %551 = vmatpush.msrb.mxu0 %v523_v18  ;;  %570 = vmatpush.msrb.mxu1 %v526_v42  ;;  %v519_v36 = vsel %vm518_vm8, %v2873_v56, %v2827_v1  ;;  %v520_v47 = vsel %vm518_vm8, %v2827_v1, %v2828_v38  ;;  %v975_v51 = vmul.f32 %v969_v3, %v3294_v9  ;;  %v3007_v18 = vunpack.i.l.bf16 %v3913_v23  ;;  %v2660_v1 = vld [vmem:[%s4475_s3 + $0x20] sm:$0xff] }
 0x175   : > { %930 = vmatpush.msra.mxu2 %v899_v43  ;;  %949 = vmatpush.msra.mxu3 %v902_v44  ;;  %v978_v20 = vmul.f32 %v970_v52, %v3355_v39  ;;  %v973_v42 = vmul.f32 %v969_v3, %v3266_v57  ;;  %v976_v63 = vmul.f32 %v970_v52, %v3296_v10  ;;  %v2838_v56 = vunpack.i.h.bf16 %v3823_v26  ;;  %v4543_v57 = vld [vmem:[#allocation4_spill] sm:$0xff] }
 0x176   : > { %552 = vmatpush.msrb.mxu0 %v521_v37  ;;  %571 = vmatpush.msrb.mxu1 %v524_v7  ;;  %v2837_v28 = vunpack.i.l.bf16 %v3823_v26  ;;  %v1105_v9 = vsel %vm841_vm4, %v2887_v13, %v2888_v8  ;;  %v974_v10 = vmul.f32 %v970_v52, %v4543_v57  ;;  %v1106_v21 = vsel %vm841_vm4, %v2888_v8, %v2892_v34 }
 0x177   : > { %931 = vmatpush.msra.mxu2 %v3817_v12  ;;  %950 = vmatpush.msra.mxu3 %v900_v33  ;;  %v3001_v22 = vpop.permute.xlu0 %3000  ;;  %v2937_v12 = vunpack.i.l.bf16 %v3876_v46  ;;  %v3008_v46 = vunpack.i.h.bf16 %v3913_v23  ;;  %v3028_v37 = vunpack.i.h.bf16 %v3959_v32  ;;  %v2907_v38 = vunpack.i.l.bf16 %v3833_v24 }
 0x178   : > { %v3003_v41 = vunpack.i.h.bf16 %v3001_v22  ;;  %v3002_v2 = vunpack.i.l.bf16 %v3001_v22  ;;  %553 = vmatpush.msrb.mxu0 %v519_v36  ;;  %572 = vmatpush.msrb.mxu1 %v522_v59  ;;  %v1103_v44 = vsel %vm841_vm4, %v2893_v19, %v2837_v28  ;;  %v2942_v33 = vunpack.i.l.bf16 %v3872_v6 }
 0x179   : > { %1134 = vmatpush.msrb.mxu2 %v1109_v45  ;;  %2645 = vmatmul.msk.f32.vlgmr.msrb.gmra.mxu0 %vm342_vm0, %v481_v29  ;;  %v1108_v39 = vsel %vm841_vm4, %v2937_v12, %v2938_v60  ;;  %v1233_v7 = vsel %vm715_vm3, %v3007_v18, %v3008_v46  ;;  %v1104_v22 = vsel %vm841_vm4, %v2837_v28, %v2838_v56  ;;  %v2948_v36 = vunpack.i.h.bf16 %v3884_v5  ;;  %v2700_v56 = vld [vmem:[%s4479_s7 + $0x4] sm:$0x3] }
 0x17a   : > { %2657 = vmatmul.msk.f32.vlgmr.msra.gmra.mxu2 %vm342_vm0, %v2656_v49  ;;  %951 = vmatpush.msra.mxu3 %v898_v15  ;;  %v3980_v50 = vpop.permute.xlu1 %3015  ;;  %v1107_v14 = vsel %vm841_vm4, %v3003_v41, %v2937_v12  ;;  %v1110_v53 = vsel %vm841_vm4, %v2998_v61, %v3002_v2  ;;  %v4003_v61 = vpop.permute.xlu2 %3030  ;;  %v2947_v59 = vunpack.i.l.bf16 %v3884_v5  ;;  %v2897_v41 = vunpack.i.l.bf16 %v3821_v55  ;;  %v2672_v55 = vld [vmem:[%s4475_s3 + $0x38] sm:$0xff] }
 0x17b   : > { %998 = vmatpush.msra.mxu0 %v979_v40  ;;  %573 = vmatpush.msrb.mxu1 %v520_v47  ;;  %v3018_v23 = vunpack.i.h.bf16 %v3980_v50  ;;  %v3017_v31 = vunpack.i.l.bf16 %v3980_v50  ;;  %v2943_v2 = vunpack.i.h.bf16 %v3872_v6  ;;  %v2987_v5 = vunpack.i.l.bf16 %v3935_v54 }
 0x17c   : > { %2646 = vmatmul.msk.f32.vlgmr.msrb.gmra.mxu1 %vm342_vm0, %v481_v29  ;;  %2658 = vmatmul.msk.f32.vlgmr.msra.gmra.mxu3 %vm342_vm0, %v2656_v49  ;;  %v3027_v49 = vunpack.i.l.bf16 %v3959_v32  ;;  %v1355_v32 = vsel %vm589_vm1, %v3028_v37, %v2947_v59  ;;  %v2913_v15 = vunpack.i.h.bf16 %v3827_v27  ;;  %v1353_v6 = vsel %vm589_vm1, %v2907_v38, %v2908_v30 }
 0x17d   : > { %999 = vmatpush.msra.mxu0 %v977_v48  ;;  %1018 = vmatpush.msra.mxu1 %v980_v58  ;;  %v1357_v3 = vsel %vm589_vm1, %v3017_v31, %v3018_v23  ;;  %v3033_v8 = vunpack.i.h.bf16 %v4003_v61  ;;  %v3032_v50 = vunpack.i.l.bf16 %v4003_v61  ;;  %v2988_v47 = vunpack.i.h.bf16 %v3935_v54 }
 0x17e   : > { %1135 = vmatpush.msrb.mxu2 %v1107_v14  ;;  %1154 = vmatpush.msrb.mxu3 %v1110_v53  ;;  %v1358_v12 = vsel %vm589_vm1, %v3018_v23, %v3027_v49  ;;  %v1356_v48 = vsel %vm589_vm1, %v2947_v59, %v2948_v36  ;;  %v1229_v27 = vsel %vm715_vm3, %v2897_v41, %v2898_v0  ;;  %v2843_v58 = vunpack.i.h.bf16 %v3799_v35  ;;  %v2668_v14 = vld [vmem:[%s4475_s3 + $0x30] sm:$0xff]  ;;  %v1573_v0 = vld [vmem:[%s4479_s7] sm:$0x3] }
 0x17f   : > { %1000 = vmatpush.msra.mxu0 %v975_v51  ;;  %1019 = vmatpush.msra.mxu1 %v978_v20  ;;  %v3011_v11 = vpop.permute.xlu0 %3010  ;;  %v1232_v24 = vsel %vm715_vm3, %v2942_v33, %v2943_v2  ;;  %v1351_v54 = vsel %vm589_vm1, %v2913_v15, %v2987_v5  ;;  %v1352_v19 = vsel %vm589_vm1, %v2987_v5, %v2988_v47 }
 0x180   : > { %1136 = vmatpush.msrb.mxu2 %v1105_v9  ;;  %1155 = vmatpush.msrb.mxu3 %v1108_v39  ;;  %v3013_v26 = vunpack.i.h.bf16 %v3011_v11  ;;  %v3012_v43 = vunpack.i.l.bf16 %v3011_v11  ;;  %v1481_v34 = vsel %vm464_vm2, %v3032_v50, %v3033_v8  ;;  %v1797_v9 = vperm.slane %v2700_v56, 0 }
 0x181   : > { %1001 = vmatpush.msra.mxu0 %v973_v42  ;;  %1020 = vmatpush.msra.mxu1 %v976_v63  ;;  %v1576_v42 = vperm.slane %v1573_v0, 1  ;;  %v1575_v63 = vperm.slane %v1573_v0, 0 }
 0x182   : > { %1137 = vmatpush.msrb.mxu2 %v1103_v44  ;;  %1156 = vmatpush.msrb.mxu3 %v1106_v21  ;;  %v4020_v29 = vpop.permute.xlu1 %3020  ;;  %v1231_v45 = vsel %vm715_vm3, %v3013_v26, %v2942_v33  ;;  %v1234_v52 = vsel %vm715_vm3, %v3008_v46, %v3012_v43  ;;  %v3036_v13 = vpop.permute.xlu2 %3035  ;;  %v2687_v26 = vld [vmem:[%s4479_s7 + $0x2] sm:$0x3]  ;;  %v1798_v21 = vperm.slane %v2700_v56, 1 }
 0x183   : > { %1258 = vmatpush.msrb.mxu0 %v1233_v7  ;;  %1021 = vmatpush.msra.mxu1 %v974_v10  ;;  %v3022_v53 = vunpack.i.l.bf16 %v4020_v29  ;;  %v3038_v51 = vunpack.i.h.bf16 %v3036_v13  ;;  %v3037_v20 = vunpack.i.l.bf16 %v3036_v13  ;;  %v2676_v10 = vld [vmem:[%s4475_s3 + $0x40] sm:$0xff]  ;;  %v1686_v43 = vperm.slane %v2687_v26, 0 }
 0x184   : > { %2661 = vmatmul.msk.f32.vlgmr.msra.gmra.mxu0 %vm342_vm0, %v2660_v1  ;;  %2665 = vmatmul.msk.f32.vlgmr.msrb.gmra.mxu2 %vm342_vm0, %v2664_v17 }
 0x185   : > { %1382 = vmatpush.msra.mxu2 %v1357_v3  ;;  %1157 = vmatpush.msrb.mxu3 %v1104_v22 }
 0x186   : > { %2662 = vmatmul.msk.f32.vlgmr.msra.gmra.mxu1 %vm342_vm0, %v2660_v1  ;;  %2666 = vmatmul.msk.f32.vlgmr.msrb.gmra.mxu3 %vm342_vm0, %v2664_v17  ;;  %v1687_v1 = vperm.slane %v2687_v26, 1  ;;  %v4102_v17 = vld [vmem:[%s4479_s7 + $0x6] sm:$0x3]  ;;  %v2739_v26 = vld [vmem:[%s4479_s7 + $0xa] sm:$0x3] }
 0x187   : > { %1383 = vmatpush.msra.mxu2 %v1355_v32  ;;  %1402 = vmatpush.msra.mxu3 %v1358_v12  ;;  %v3041_v40 = vpop.permute.xlu0 %3040  ;;  %v1908_v37 = vperm.slane %v4102_v17, 0 }
 0x188   : > { %1259 = vmatpush.msrb.mxu0 %v1231_v45  ;;  %1278 = vmatpush.msrb.mxu1 %v1234_v52  ;;  %v3043_v30 = vunpack.i.h.bf16 %v3041_v40  ;;  %v3042_v60 = vunpack.i.l.bf16 %v3041_v40 }
 0x189   : > { %1384 = vmatpush.msra.mxu2 %v1353_v6  ;;  %1403 = vmatpush.msra.mxu3 %v1356_v48 }
 0x18a   : > { %1260 = vmatpush.msrb.mxu0 %v1229_v27  ;;  %1279 = vmatpush.msrb.mxu1 %v1232_v24  ;;  %v3051_v46 = vpop.permute.xlu1 %3050  ;;  %v1479_v18 = vsel %vm464_vm2, %v3043_v30, %v3022_v53  ;;  %v441_v36 = vpop.permute.xlu2 %440 }
 0x18b   : > { %1385 = vmatpush.msra.mxu2 %v1351_v54  ;;  %1404 = vmatpush.msra.mxu3 %v3843_v25  ;;  %v3023_v25 = vunpack.i.h.bf16 %v4020_v29  ;;  %v3052_v39 = vunpack.i.l.bf16 %v3051_v46  ;;  %v3053_v61 = vunpack.i.h.bf16 %v3051_v46 }
 0x18c   : > { %1261 = vmatpush.msrb.mxu0 %v3861_v4  ;;  %1280 = vmatpush.msrb.mxu1 %v3866_v16  ;;  %v1228_v4 = vsel %vm715_vm3, %v2842_v62, %v2843_v58  ;;  %v1482_v16 = vsel %vm464_vm2, %v3033_v8, %v3042_v60  ;;  %v1477_v62 = vsel %vm464_vm2, %v3037_v20, %v3038_v51 }
 0x18d   : > { %2669 = vmatmul.msk.f32.vlgmr.msrb.gmra.mxu0 %vm342_vm0, %v2668_v14  ;;  %2673 = vmatmul.msk.f32.vlgmr.msra.gmra.mxu2 %vm342_vm0, %v2672_v55  ;;  %v1480_v23 = vsel %vm464_vm2, %v3022_v53, %v3023_v25  ;;  %v1476_v44 = vsel %vm464_vm2, %v3052_v39, %v3053_v61 }
 0x18e   : > { %1405 = vmatpush.msra.mxu3 %v1352_v19  ;;  %1506 = vmatpush.msra.mxu0 %v1481_v34 }
 0x18f   : > { %1281 = vmatpush.msrb.mxu1 %v1228_v4  ;;  %2674 = vmatmul.msk.f32.vlgmr.msra.gmra.mxu3 %vm342_vm0, %v2672_v55  ;;  %v3046_v28 = vpop.permute.xlu0 %3045 }
 0x190   : > { %2670 = vmatmul.msk.f32.vlgmr.msrb.gmra.mxu1 %vm342_vm0, %v2668_v14  ;;  %1507 = vmatpush.msra.mxu0 %v1479_v18  ;;  %v3048_v11 = vunpack.i.h.bf16 %v3046_v28  ;;  %v3047_v35 = vunpack.i.l.bf16 %v3046_v28 }
 0x191   : > { %1526 = vmatpush.msra.mxu1 %v1482_v16  ;;  %1579 = vrot.lane.b32.xlu1 %v1576_v42, %s3106_s9 }
 0x192   : > { %1508 = vmatpush.msra.mxu0 %v1477_v62  ;;  %v1475_v31 = vsel %vm464_vm2, %v3048_v11, %v3052_v39  ;;  %v1478_v57 = vsel %vm464_vm2, %v3038_v51, %v3047_v35  ;;  %1577 = vrot.lane.b32.xlu0 %v1575_v63, %s3106_s9  ;;  %v2752_v35 = vld [vmem:[%s4479_s7 + $0xc] sm:$0x3] }
 0x193   : > { %1527 = vmatpush.msra.mxu1 %v1480_v23  ;;  %1799 = vrot.lane.b32.xlu2 %v1797_v9, %s3105_s30  ;;  %v2226_v23 = vperm.slane %v2752_v35, 0 }
 0x194   : > { %1509 = vmatpush.msra.mxu0 %v1475_v31 }
 0x195   : > { %1528 = vmatpush.msra.mxu1 %v1478_v57  ;;  %2677 = vmatmul.msk.f32.vlgmr.msra.gmra.mxu0 %vm342_vm0, %v2676_v10  ;;  %v1909_v57 = vperm.slane %v4102_v17, 1 }
 0x197   : > { %1529 = vmatpush.msra.mxu1 %v1476_v44 }
 0x198   : > { %2678 = vmatmul.msk.f32.vlgmr.msra.gmra.mxu1 %vm342_vm0, %v2676_v10 }
 0x199   : > { %1688 = vrot.lane.b32.xlu1 %v1686_v43, %s3104_s13 }
 0x19a   : > { %1801 = vrot.lane.b32.xlu0 %v1798_v21, %s3105_s30  ;;  %v2116_v21 = vperm.slane %v2739_v26, 1 }
 0x19b   : > { %1690 = vrot.lane.b32.xlu2 %v1687_v1, %s3104_s13 }
 0x1a3   : > { %1910 = vrot.lane.b32.xlu2 %v1908_v37, %s3107_s16 }
 0x1eb   : > { %v681_v7 = vpop.f32.mrf.mxu2 }
 0x1ed   : > { %v701_v38 = vpop.f32.mrf.mxu3  ;;  %v1800_v9 = vpop.permute.xlu2 %1799 }
 0x1f3   : > { %v807_v33 = vpop.f32.mrf.mxu2 }
 0x1f5   : > { %v827_v29 = vpop.f32.mrf.mxu3  ;;  %v1691_v43 = vpop.permute.xlu2 %1690 }
 0x1f6   : > { %v555_v22 = vpop.f32.mrf.mxu0 }
 0x1f7   : > { %v578_v59 = vadd.f32 %v555_v22, %v441_v36  ;;  %v2227_v22 = vperm.slane %v2752_v35, 1 }
 0x1f9   : > { %v575_v49 = vpop.f32.mrf.mxu1  ;;  %v704_v41 = vadd.f32 %v681_v7, %v578_v59 }
 0x1fa   : > { %v579_v3 = vadd.f32 %v575_v49, %v441_v36  ;;  %v2765_v36 = vld [vmem:[%s4479_s7 + $0xe] sm:$0x3] }
 0x1fb   : > { %v830_v5 = vadd.f32 %v807_v33, %v704_v41  ;;  %v2338_v59 = vperm.slane %v2765_v36, 1 }
 0x1fc   : > { %v705_v52 = vadd.f32 %v701_v38, %v579_v3  ;;  %v4140_v38 = vld [vmem:[%s4479_s7 + $0x10] sm:$0x3] }
 0x1fd   : > { %v933_v2 = vpop.f32.mrf.mxu2  ;;  %v2448_v33 = vperm.slane %v4140_v38, 0  ;;  %v1911_v49 = vpop.permute.xlu2 %1910 }
 0x1fe   : > { %v831_v15 = vadd.f32 %v827_v29, %v705_v52  ;;  %v956_v6 = vadd.f32 %v933_v2, %v830_v5  ;;  %v2115_v29 = vperm.slane %v2739_v26, 0  ;;  %v2726_v5 = vld [vmem:[%s4479_s7 + $0x8] sm:$0x3]  ;;  %v1591_v26 = vld [vmem:[%s4477_s5 + $0x18] sm:$0xff] }
 0x1ff   : > { %v953_v45 = vpop.f32.mrf.mxu3 }
 0x200   : > { %v957_v8 = vadd.f32 %v953_v45, %v831_v15 }
 0x201   : > { %v1003_v32 = vpop.f32.mrf.mxu0 }
 0x202   : > { %v1026_v50 = vadd.f32 %v1003_v32, %v956_v6  ;;  %v1588_v32 = vld [vmem:[%s4477_s5] sm:$0xff]  ;;  %v2021_v6 = vperm.slane %v2726_v5, 0 }
 0x203   : > { %v1023_v12 = vpop.f32.mrf.mxu1  ;;  %v1580_v46 = vpop.permute.xlu1 %1579 }
 0x204   : > { %v1027_v24 = vadd.f32 %v1023_v12, %v957_v8  ;;  %v1578_v54 = vpop.permute.xlu0 %1577 }
 0x205   : > { %v1581_v42 = vsel %vm464_vm2, %v1578_v54, %v1580_v46 }
 0x207   : > { %v1139_v40 = vpop.f32.mrf.mxu2 }
 0x208   : > { %v1162_v27 = vadd.f32 %v1139_v40, %v1026_v50  ;;  %v2022_v40 = vperm.slane %v2726_v5, 1 }
 0x209   : > { %v1159_v47 = vpop.f32.mrf.mxu3 }
 0x20a   : > { %v1263_v48 = vpop.f32.mrf.mxu0  ;;  %v1163_v58 = vadd.f32 %v1159_v47, %v1027_v24 }
 0x20b   : > { %v1286_v13 = vadd.f32 %v1263_v48, %v1162_v27  ;;  %v1689_v10 = vpop.permute.xlu1 %1688 }
 0x20c   : > { %v1802_v4 = vpop.permute.xlu0 %1801  ;;  %v1692_v44 = vsel %vm589_vm1, %v1689_v10, %v1691_v43 }
 0x20d   : > { %v1283_v30 = vpop.f32.mrf.mxu1  ;;  %v1803_v39 = vsel %vm715_vm3, %v1800_v9, %v1802_v4 }
 0x20e   : > { %v1287_v55 = vadd.f32 %v1283_v30, %v1163_v58 }
 0x210   : > { %v1387_v60 = vpop.f32.mrf.mxu2 }
 0x211   : > { %v1410_v14 = vadd.f32 %v1387_v60, %v1286_v13 }
 0x212   : > { %v1407_v0 = vpop.f32.mrf.mxu3  ;;  %v1511_v53 = vpop.f32.mrf.mxu0 }
 0x213   : > { %v1534_v19 = vadd.f32 %v1511_v53, %v1410_v14  ;;  %v1411_v34 = vadd.f32 %v1407_v0, %v1287_v55  ;;  %v1589_v55 = vld [vmem:[%s4477_s5 + $0x8] sm:$0xff] }
 0x215   : > { %v1531_v51 = vpop.f32.mrf.mxu1  ;;  %v4106_v18 = vmax.f32 %v1534_v19, 0.0 }
 0x216   : > { %v1535_v20 = vadd.f32 %v1531_v51, %v1411_v34  ;;  %v2337_v34 = vperm.slane %v2765_v36, 0 }
 0x217   : > { %v1586_v28 = vmul.f32 %v1581_v42, %v4106_v18  ;;  %v1808_v61 = vmul.f32 %v1803_v39, %v4106_v18  ;;  %v1697_v17 = vmul.f32 %v1692_v44, %v4106_v18  ;;  %v2025_v30 = vmul.f32 %v2021_v6, %v4106_v18 }
 0x218   : > { %v4109_v25 = vmax.f32 %v1535_v20, 0.0  ;;  %v2449_v42 = vperm.slane %v4140_v38, 1  ;;  %v2704_v38 = vld [vmem:[%s4477_s5 + $0x58] sm:$0xff] }
 0x21a   : > { %v1809_v16 = vmul.f32 %v1802_v4, %v4109_v25  ;;  %v1587_v63 = vmul.f32 %v1580_v46, %v4109_v25  ;;  %v1585_v56 = vmul.f32 %v1578_v54, %v4109_v25  ;;  %v1807_v62 = vmul.f32 %v1800_v9, %v4109_v25  ;;  %v1590_v4 = vld [vmem:[%s4477_s5 + $0x10] sm:$0xff] }
 0x21b   : > { %v1696_v1 = vmul.f32 %v1689_v10, %v4109_v25  ;;  %v1698_v37 = vmul.f32 %v1691_v43, %v4109_v25  ;;  %v2026_v58 = vmul.f32 %v2022_v40, %v4109_v25  ;;  %v1918_v60 = vmul.f32 %v1911_v49, %v4109_v25  ;;  %v2689_v43 = vld [vmem:[%s4477_s5 + $0x28] sm:$0xff] }
 0x21c   : > { %1822 = vrot.lane.b32.xlu2 %v1809_v16, %s3109_s24  ;;  %1599 = vrot.lane.b32.xlu1 %v1587_v63, %s3111_s17  ;;  %v3054_v11 = vpack.i.bf16 %v1586_v28, %v1585_v56  ;;  %v3059_v31 = vpack.i.bf16 %v1808_v61, %v1807_v62  ;;  %v2688_v56 = vld [vmem:[%s4477_s5 + $0x20] sm:$0xff] }
 0x21d   : > { %v3064_v7 = vpack.i.bf16 %v1697_v17, %v1696_v1  ;;  %v2690_v1 = vld [vmem:[%s4477_s5 + $0x30] sm:$0xff]  ;;  %v2702_v17 = vld [vmem:[%s4477_s5 + $0x48] sm:$0xff] }
 0x21e   : > { %3055 = vrot.lane.b32.xlu0 %v3054_v11, %s3111_s17 }
 0x224   : > { %2228 = vrot.lane.b32.xlu2 %v2226_v23, %s3109_s24  ;;  %3060 = vrot.lane.b32.xlu1 %v3059_v31, %s3109_s24 }
 0x226   : > { %1912 = vrot.lane.b32.xlu0 %v1909_v57, %s3107_s16 }
 0x22c   : > { %2119 = vrot.lane.b32.xlu2 %v2116_v21, %s3108_s23  ;;  %1711 = vrot.lane.b32.xlu1 %v1698_v37, %s3110_s11  ;;  %v2701_v21 = vld [vmem:[%s4477_s5 + $0x40] sm:$0xff] }
 0x22e   : > { %3065 = vrot.lane.b32.xlu0 %v3064_v7, %s3110_s11  ;;  %v2703_v7 = vld [vmem:[%s4477_s5 + $0x50] sm:$0xff] }
 0x234   : > { %2450 = vrot.lane.b32.xlu2 %v2448_v33, %s3111_s17  ;;  %2117 = vrot.lane.b32.xlu1 %v2115_v29, %s3108_s23  ;;  %v2691_v33 = vld [vmem:[%s4477_s5 + $0x38] sm:$0xff]  ;;  %v2727_v29 = vld [vmem:[%s4477_s5 + $0x80] sm:$0xff] }
 0x236   : > { %2230 = vrot.lane.b32.xlu0 %v2227_v22, %s3109_s24  ;;  %v2728_v22 = vld [vmem:[%s4477_s5 + $0x88] sm:$0xff] }
 0x23c   : > { %2341 = vrot.lane.b32.xlu2 %v2338_v59, %s3110_s11  ;;  %v2729_v59 = vld [vmem:[%s4477_s5 + $0x90] sm:$0xff] }
 0x276   : > { %v1823_v2 = vpop.permute.xlu2 %1822 }
 0x27e   : > { %v2229_v0 = vpop.permute.xlu2 %2228 }
 0x27f   : > { %v2236_v57 = vmul.f32 %v2229_v0, %v4106_v18 }
 0x286   : > { %v2120_v28 = vpop.permute.xlu2 %2119 }
 0x287   : > { %v2127_v37 = vmul.f32 %v2120_v28, %v4106_v18 }
 0x28e   : > { %v1600_v3 = vpop.permute.xlu1 %1599  ;;  %v2451_v36 = vpop.permute.xlu2 %2450 }
 0x290   : > { %v3056_v41 = vpop.permute.xlu0 %3055 }
 0x291   : > { %v3058_v45 = vunpack.i.h.bf16 %v3056_v41  ;;  %v3057_v52 = vunpack.i.l.bf16 %v3056_v41 }
 0x293   : > { %v1601_v12 = vsel %vm518_vm8, %v3057_v52, %v3058_v45  ;;  %v1602_v15 = vsel %vm518_vm8, %v3058_v45, %v1600_v3  ;;  %v2730_v3 = vld [vmem:[%s4477_s5 + $0x98] sm:$0xff] }
 0x294   : > { %1633 = vmatpush.msrb.mxu2 %v1601_v12  ;;  %1662 = vmatpush.msrb.mxu3 %v1602_v15  ;;  %v2714_v15 = vld [vmem:[%s4477_s5 + $0x60] sm:$0xff] }
 0x295   : > { %2679 = vmatmul.msk.f32.vlgmr.msrb.gmra.mxu2 %vm1605_vm9, %v1588_v32  ;;  %2683 = vmatmul.msk.f32.vlgmr.msrb.gmra.mxu3 %vm1605_vm9, %v1588_v32 }
 0x296   : > { %v3061_v8 = vpop.permute.xlu1 %3060 }
 0x297   : > { %v3063_v50 = vunpack.i.h.bf16 %v3061_v8  ;;  %v3062_v47 = vunpack.i.l.bf16 %v3061_v8 }
 0x298   : > { %v1913_v48 = vpop.permute.xlu0 %1912 }
 0x299   : > { %v1824_v27 = vsel %vm770_vm5, %v3062_v47, %v3063_v50  ;;  %v1825_v24 = vsel %vm770_vm5, %v3063_v50, %v1823_v2  ;;  %v1914_v13 = vsel %vm841_vm4, %v1911_v49, %v1913_v48  ;;  %v1920_v54 = vmul.f32 %v1913_v48, %v4109_v25  ;;  %v2342_v49 = vpop.permute.xlu2 %2341 }
 0x29a   : > { %1855 = vmatpush.msra.mxu2 %v1824_v27  ;;  %1884 = vmatpush.msra.mxu3 %v1825_v24  ;;  %v1919_v14 = vmul.f32 %v1914_v13, %v4106_v18 }
 0x29b   : > { %1933 = vrot.lane.b32.xlu1 %v1920_v54, %s3108_s23  ;;  %v2458_v54 = vmul.f32 %v2451_v36, %v4106_v18 }
 0x29c   : > { %2059 = vmatpush.msrb.mxu2 %v2025_v30  ;;  %2088 = vmatpush.msrb.mxu3 %v2026_v58  ;;  %v3069_v53 = vpack.i.bf16 %v1919_v14, %v1918_v60  ;;  %v2715_v14 = vld [vmem:[%s4477_s5 + $0x68] sm:$0xff] }
 0x29d   : > { %2680 = vmatmul.msk.f32.gmra.mxu2 %vm1605_vm9, %v1589_v55  ;;  %2684 = vmatmul.msk.f32.gmra.mxu3 %vm1605_vm9, %v1589_v55 }
 0x29e   : > { %v1712_v19 = vpop.permute.xlu1 %1711  ;;  %3070 = vrot.lane.b32.xlu0 %v3069_v53, %s3108_s23  ;;  %v1542_v53 = vld [vmem:[%s4478_s6] sm:$0xff] }
 0x2a0   : > { %v3066_v51 = vpop.permute.xlu0 %3065 }
 0x2a1   : > { %v3068_v20 = vunpack.i.h.bf16 %v3066_v51  ;;  %v3067_v46 = vunpack.i.l.bf16 %v3066_v51 }
 0x2a3   : > { %2339 = vrot.lane.b32.xlu1 %v2337_v34, %s3110_s11  ;;  %v1713_v16 = vsel %vm644_vm7, %v3067_v46, %v3068_v20  ;;  %v1714_v63 = vsel %vm644_vm7, %v3068_v20, %v1712_v19  ;;  %v2716_v20 = vld [vmem:[%s4477_s5 + $0x70] sm:$0xff]  ;;  %s4450_s11 = scalar_lea.vmem %s4480_s8, %s2793_s14 }
 0x2a4   : > { %1744 = vmatpush.msrb.mxu0 %v1713_v16  ;;  %1773 = vmatpush.msrb.mxu1 %v1714_v63  ;;  %v2349_v16 = vmul.f32 %v2342_v49, %v4106_v18 }
 0x2a5   : > { %2681 = vmatmul.msk.f32.gmra.mxu2 %vm1605_vm9, %v1590_v4  ;;  %2685 = vmatmul.msk.f32.gmra.mxu3 %vm1605_vm9, %v1590_v4  ;;  %v2753_v4 = vld [vmem:[%s4477_s5 + $0xc0] sm:$0xff] }
 0x2a6   : > { %v2118_v9 = vpop.permute.xlu1 %2117  ;;  %2452 = vrot.lane.b32.xlu0 %v2449_v42, %s3111_s17  ;;  %2692 = vmatmul.msk.f32.vlgmr.msrb.gmra.mxu0 %vm1605_vm9, %v2688_v56 }
 0x2a7   : > { %v2121_v39 = vsel %vm896_vm6, %v2118_v9, %v2120_v28  ;;  %v2125_v11 = vmul.f32 %v2118_v9, %v4106_v18  ;;  %2696 = vmatmul.msk.f32.vlgmr.msrb.gmra.mxu1 %vm1605_vm9, %v2688_v56  ;;  %v1545_v56 = vld [vmem:[%s4478_s6 + $0x18] sm:$0xff]  ;;  %v2754_v9 = vld [vmem:[%s4477_s5 + $0xc8] sm:$0xff] }
 0x2a8   : > { %v2126_v35 = vmul.f32 %v2121_v39, %v4109_v25  ;;  %v2231_v62 = vpop.permute.xlu0 %2230  ;;  %v1544_v39 = vld [vmem:[%s4478_s6 + $0x10] sm:$0xff] }
 0x2a9   : > { %v2232_v23 = vsel %vm770_vm5, %v2229_v0, %v2231_v62  ;;  %v2238_v31 = vmul.f32 %v2231_v62, %v4106_v18  ;;  %v2741_v62 = vld [vmem:[%s4477_s5 + $0xa8] sm:$0xff] }
 0x2aa   : > { %v3079_v61 = vpack.i.bf16 %v2126_v35, %v2125_v11  ;;  %v2237_v10 = vmul.f32 %v2232_v23, %v4109_v25  ;;  %v2740_v11 = vld [vmem:[%s4477_s5 + $0xa0] sm:$0xff]  ;;  %v2755_v35 = vld [vmem:[%s4477_s5 + $0xd0] sm:$0xff] }
 0x2ab   : > { %2251 = vrot.lane.b32.xlu1 %v2238_v31, %s3105_s30 }
 0x2ac   : > { %3080 = vrot.lane.b32.xlu2 %v3079_v61, %s3107_s16  ;;  %v3074_v44 = vpack.i.bf16 %v2237_v10, %v2236_v57  ;;  %v2756_v61 = vld [vmem:[%s4477_s5 + $0xd8] sm:$0xff]  ;;  %v2742_v57 = vld [vmem:[%s4477_s5 + $0xb0] sm:$0xff] }
 0x2ad   : > { %2682 = vmatmul.msk.f32.gmra.mxu2 %vm1605_vm9, %v1591_v26  ;;  %2686 = vmatmul.msk.f32.gmra.mxu3 %vm1605_vm9, %v1591_v26  ;;  %v2743_v10 = vld [vmem:[%s4477_s5 + $0xb8] sm:$0xff] }
 0x2ae   : > { %3075 = vrot.lane.b32.xlu0 %v3074_v44, %s3105_s30  ;;  %2693 = vmatmul.msk.f32.gmra.mxu0 %vm1605_vm9, %v2689_v43 }
 0x2af   : > { %2697 = vmatmul.msk.f32.gmra.mxu1 %vm1605_vm9, %v2689_v43 }
 0x2b5   : > { %2705 = vmatmul.msk.f32.vlgmr.msra.gmra.mxu2 %vm1605_vm9, %v2701_v21  ;;  %2709 = vmatmul.msk.f32.vlgmr.msra.gmra.mxu3 %vm1605_vm9, %v2701_v21 }
 0x2b6   : > { %2140 = vrot.lane.b32.xlu0 %v2127_v37, %s3107_s16  ;;  %2694 = vmatmul.msk.f32.gmra.mxu0 %vm1605_vm9, %v2690_v1 }
 0x2b7   : > { %2698 = vmatmul.msk.f32.gmra.mxu1 %vm1605_vm9, %v2690_v1 }
 0x2bd   : > { %2706 = vmatmul.msk.f32.gmra.mxu2 %vm1605_vm9, %v2702_v17  ;;  %2710 = vmatmul.msk.f32.gmra.mxu3 %vm1605_vm9, %v2702_v17 }
 0x2be   : > { %2695 = vmatmul.msk.f32.gmra.mxu0 %vm1605_vm9, %v2691_v33 }
 0x2bf   : > { %2699 = vmatmul.msk.f32.gmra.mxu1 %vm1605_vm9, %v2691_v33 }
 0x2c5   : > { %2707 = vmatmul.msk.f32.gmra.mxu2 %vm1605_vm9, %v2703_v7  ;;  %2711 = vmatmul.msk.f32.gmra.mxu3 %vm1605_vm9, %v2703_v7 }
 0x2cd   : > { %2708 = vmatmul.msk.f32.gmra.mxu2 %vm1605_vm9, %v2704_v38  ;;  %2712 = vmatmul.msk.f32.gmra.mxu3 %vm1605_vm9, %v2704_v38 }
 0x2d5   : > { %2731 = vmatmul.msk.f32.vlgmr.msrb.gmra.mxu2 %vm1605_vm9, %v2727_v29  ;;  %2735 = vmatmul.msk.f32.vlgmr.msrb.gmra.mxu3 %vm1605_vm9, %v2727_v29 }
 0x2dd   : > { %2732 = vmatmul.msk.f32.gmra.mxu2 %vm1605_vm9, %v2728_v22  ;;  %2736 = vmatmul.msk.f32.gmra.mxu3 %vm1605_vm9, %v2728_v22 }
 0x2e5   : > { %2733 = vmatmul.msk.f32.gmra.mxu2 %vm1605_vm9, %v2729_v59  ;;  %2737 = vmatmul.msk.f32.gmra.mxu3 %vm1605_vm9, %v2729_v59 }
 0x2ed   : > { %2734 = vmatmul.msk.f32.gmra.mxu2 %vm1605_vm9, %v2730_v3  ;;  %2738 = vmatmul.msk.f32.gmra.mxu3 %vm1605_vm9, %v2730_v3 }
 0x306   : > { %v3081_v2 = vpop.permute.xlu2 %3080 }
 0x307   : > { %v3083_v52 = vunpack.i.h.bf16 %v3081_v2  ;;  %v3082_v5 = vunpack.i.l.bf16 %v3081_v2 }
 0x309   : > { %v2142_v50 = vsel %vm841_vm4, %v3082_v5, %v3083_v52 }
 0x30d   : > { %v1934_v41 = vpop.permute.xlu1 %1933 }
 0x310   : > { %v3071_v45 = vpop.permute.xlu0 %3070 }
 0x311   : > { %v3073_v32 = vunpack.i.h.bf16 %v3071_v45  ;;  %v3072_v12 = vunpack.i.l.bf16 %v3071_v45 }
 0x313   : > { %v1935_v6 = vsel %vm896_vm6, %v3072_v12, %v3073_v32  ;;  %v1936_v40 = vsel %vm896_vm6, %v3073_v32, %v1934_v41 }
 0x314   : > { %1966 = vmatpush.msra.mxu0 %v1935_v6  ;;  %1995 = vmatpush.msra.mxu1 %v1936_v40 }
 0x315   : > { %v2340_v8 = vpop.permute.xlu1 %2339  ;;  %2718 = vmatmul.msk.f32.vlgmr.msra.gmra.mxu0 %vm1605_vm9, %v2714_v15  ;;  %2722 = vmatmul.msk.f32.vlgmr.msra.gmra.mxu1 %vm1605_vm9, %v2714_v15 }
 0x316   : > { %v2343_v47 = vsel %vm644_vm7, %v2340_v8, %v2342_v49  ;;  %v2347_v48 = vmul.f32 %v2340_v8, %v4106_v18  ;;  %2173 = vmatpush.msrb.mxu0 %v2142_v50 }
 0x317   : > { %v2348_v27 = vmul.f32 %v2343_v47, %v4109_v25 }
 0x318   : > { %v2453_v24 = vpop.permute.xlu0 %2452  ;;  %v1635_v23 = vpop.f32.mrf.mxu2 }
 0x319   : > { %v3089_v30 = vpack.i.bf16 %v2348_v27, %v2347_v48  ;;  %v2454_v58 = vsel %vm518_vm8, %v2451_v36, %v2453_v24  ;;  %v2460_v13 = vmul.f32 %v2453_v24, %v4106_v18  ;;  %v2717_v18 = vld [vmem:[%s4477_s5 + $0x78] sm:$0xff]  ;;  %v1664_v31 = vpop.f32.mrf.mxu3 }
 0x31a   : > { %v2459_v60 = vmul.f32 %v2454_v58, %v4109_v25  ;;  %v1543_v25 = vld [vmem:[%s4478_s6 + $0x8] sm:$0xff] }
 0x31b   : > { %3090 = vrot.lane.b32.xlu0 %v3089_v30, %s3104_s13  ;;  %2473 = vrot.lane.b32.xlu2 %v2460_v13, %s3106_s9 }
 0x31c   : > { %v3084_v55 = vpack.i.bf16 %v2459_v60, %v2458_v54 }
 0x31d   : > { %2719 = vmatmul.msk.f32.gmra.mxu0 %vm1605_vm9, %v2715_v14  ;;  %2723 = vmatmul.msk.f32.gmra.mxu1 %vm1605_vm9, %v2715_v14  ;;  %v2252_v51 = vpop.permute.xlu1 %2251 }
 0x31e   : > { %3085 = vrot.lane.b32.xlu1 %v3084_v55, %s3106_s9 }
 0x320   : > { %v3076_v0 = vpop.permute.xlu0 %3075  ;;  %v1638_v26 = vpop.f32.mrf.mxu2 }
 0x321   : > { %v3078_v19 = vunpack.i.h.bf16 %v3076_v0  ;;  %v3077_v34 = vunpack.i.l.bf16 %v3076_v0  ;;  %v1667_v43 = vpop.f32.mrf.mxu3 }
 0x323   : > { %1553 = vperm.xlu0 %2812, %v1543_v25   ;;  %1548 = vperm.xlu2 %2813, %v1542_v53   ;;  %v2253_v46 = vsel %vm715_vm3, %v3077_v34, %v3078_v19  ;;  %v2254_v42 = vsel %vm715_vm3, %v3078_v19, %v2252_v51  ;;  %v1746_v17 = vpop.f32.mrf.mxu0  ;;  %v2766_v25 = vld [vmem:[%s4477_s5 + $0xe0] sm:$0xff] }
 0x324   : > { %2284 = vmatpush.msra.mxu2 %v2253_v46  ;;  %2313 = vmatpush.msra.mxu3 %v2254_v42  ;;  %v1775_v7 = vpop.f32.mrf.mxu1 }
 0x325   : > { %2720 = vmatmul.msk.f32.gmra.mxu0 %vm1605_vm9, %v2716_v20  ;;  %2724 = vmatmul.msk.f32.gmra.mxu1 %vm1605_vm9, %v2716_v20  ;;  %v2779_v20 = vld [vmem:[%s4477_s5 + $0x100] sm:$0xff] }
 0x326   : > { %2362 = vrot.lane.b32.xlu1 %v2349_v16, %s3104_s13  ;;  %2757 = vmatmul.msk.f32.vlgmr.msra.gmra.mxu2 %vm1605_vm9, %v2753_v4 }
 0x327   : > { %2761 = vmatmul.msk.f32.vlgmr.msra.gmra.mxu3 %vm1605_vm9, %v2753_v4 }
 0x328   : > { %v2141_v63 = vpop.permute.xlu0 %2140  ;;  %v4353_v44 = vpop.f32.mrf.mxu2 }
 0x329   : > { %v2143_v28 = vsel %vm841_vm4, %v3083_v52, %v2141_v63  ;;  %v4355_v21 = vpop.f32.mrf.mxu3 }
 0x32a   : > { %2202 = vmatpush.msrb.mxu1 %v2143_v28 }
 0x32b   : > { %1563 = vperm.xlu2 %2813, %v1545_v56   ;;  %v1749_v29 = vpop.f32.mrf.mxu0  ;;  %v2767_v56 = vld [vmem:[%s4477_s5 + $0xe8] sm:$0xff] }
 0x32c   : > { %v1778_v22 = vpop.f32.mrf.mxu1 }
 0x32d   : > { %2721 = vmatmul.msk.f32.gmra.mxu0 %vm1605_vm9, %v2717_v18  ;;  %2725 = vmatmul.msk.f32.gmra.mxu1 %vm1605_vm9, %v2717_v18 }
 0x32e   : > { %2758 = vmatmul.msk.f32.gmra.mxu2 %vm1605_vm9, %v2754_v9  ;;  %1558 = vperm.xlu1 %3094, %v1544_v39  }
 0x32f   : > { %2762 = vmatmul.msk.f32.gmra.mxu3 %vm1605_vm9, %v2754_v9 }
 0x330   : > { %v1644_v1 = vpop.f32.mrf.mxu2 }
 0x331   : > { %v1673_v37 = vpop.f32.mrf.mxu3 }
 0x333   : > { %v4357_v3 = vpop.f32.mrf.mxu0 }
 0x334   : > { %v4359_v41 = vpop.f32.mrf.mxu1 }
 0x335   : > { %2744 = vmatmul.msk.f32.vlgmr.msrb.gmra.mxu0 %vm1605_vm9, %v2740_v11  ;;  %2748 = vmatmul.msk.f32.vlgmr.msrb.gmra.mxu1 %vm1605_vm9, %v2740_v11 }
 0x336   : > { %2759 = vmatmul.msk.f32.gmra.mxu2 %vm1605_vm9, %v2755_v35 }
 0x337   : > { %2763 = vmatmul.msk.f32.gmra.mxu3 %vm1605_vm9, %v2755_v35 }
 0x338   : > { %v1857_v38 = vpop.f32.mrf.mxu2 }
 0x339   : > { %v1886_v33 = vpop.f32.mrf.mxu3 }
 0x33b   : > { %v1755_v8 = vpop.f32.mrf.mxu0 }
 0x33c   : > { %v1784_v47 = vpop.f32.mrf.mxu1 }
 0x33d   : > { %2745 = vmatmul.msk.f32.gmra.mxu0 %vm1605_vm9, %v2741_v62  ;;  %2749 = vmatmul.msk.f32.gmra.mxu1 %vm1605_vm9, %v2741_v62  ;;  %v2780_v62 = vld [vmem:[%s4477_s5 + $0x108] sm:$0xff] }
 0x33e   : > { %2760 = vmatmul.msk.f32.gmra.mxu2 %vm1605_vm9, %v2756_v61 }
 0x33f   : > { %2764 = vmatmul.msk.f32.gmra.mxu3 %vm1605_vm9, %v2756_v61  ;;  %v2768_v61 = vld [vmem:[%s4477_s5 + $0xf0] sm:$0xff] }
 0x340   : > { %v1860_v36 = vpop.f32.mrf.mxu2 }
 0x341   : > { %v1889_v59 = vpop.f32.mrf.mxu3 }
 0x345   : > { %2746 = vmatmul.msk.f32.gmra.mxu0 %vm1605_vm9, %v2742_v57  ;;  %2750 = vmatmul.msk.f32.gmra.mxu1 %vm1605_vm9, %v2742_v57 }
 0x348   : > { %v4361_v2 = vpop.f32.mrf.mxu2 }
 0x349   : > { %v4363_v52 = vpop.f32.mrf.mxu3 }
 0x34d   : > { %2747 = vmatmul.msk.f32.gmra.mxu0 %vm1605_vm9, %v2743_v10  ;;  %2751 = vmatmul.msk.f32.gmra.mxu1 %vm1605_vm9, %v2743_v10 }
 0x350   : > { %v1866_v24 = vpop.f32.mrf.mxu2 }
 0x351   : > { %v1895_v30 = vpop.f32.mrf.mxu3 }
 0x375   : > { %v2474_v49 = vpop.permute.xlu2 %2473 }
 0x37d   : > { %v1549_v45 = vpop.permute.xlu2 %1548 }
 0x37e   : > { %v1676_v5 = vadd.f32 %v1635_v23, %v1549_v45  ;;  %v1677_v32 = vadd.f32 %v1664_v31, %v1549_v45  ;;  %v2781_v23 = vld [vmem:[%s4477_s5 + $0x110] sm:$0xff] }
 0x380   : > { %v1787_v12 = vadd.f32 %v1746_v17, %v1676_v5  ;;  %v1788_v15 = vadd.f32 %v1775_v7, %v1677_v32 }
 0x382   : > { %v4365_v6 = vadd.f32 %v1857_v38, %v1787_v12  ;;  %v4367_v40 = vadd.f32 %v1886_v33, %v1788_v15  ;;  %v2061_v38 = vpop.f32.mrf.mxu2  ;;  %v2090_v33 = vpop.f32.mrf.mxu3 }
 0x385   : > { %v1564_v50 = vpop.permute.xlu2 %1563 }
 0x386   : > { %v1682_v48 = vadd.f32 %v1644_v1, %v1564_v50  ;;  %v1683_v27 = vadd.f32 %v1673_v37, %v1564_v50  ;;  %v2769_v1 = vld [vmem:[%s4477_s5 + $0xf8] sm:$0xff] }
 0x388   : > { %v1793_v58 = vadd.f32 %v1755_v8, %v1682_v48  ;;  %v1794_v13 = vadd.f32 %v1784_v47, %v1683_v27 }
 0x38a   : > { %v4369_v54 = vadd.f32 %v1866_v24, %v1793_v58  ;;  %v4371_v60 = vadd.f32 %v1895_v30, %v1794_v13 }
 0x38d   : > { %v3091_v14 = vpop.permute.xlu0 %3090 }
 0x38e   : > { %v3093_v55 = vunpack.i.h.bf16 %v3091_v14  ;;  %v3092_v0 = vunpack.i.l.bf16 %v3091_v14 }
 0x390   : > { %v3086_v53 = vpop.permute.xlu1 %3085  ;;  %v2364_v19 = vsel %vm589_vm1, %v3092_v0, %v3093_v55 }
 0x391   : > { %v3088_v34 = vunpack.i.h.bf16 %v3086_v53  ;;  %v3087_v51 = vunpack.i.l.bf16 %v3086_v53  ;;  %2395 = vmatpush.msra.mxu0 %v2364_v19 }
 0x392   : > { %2770 = vmatmul.msk.f32.vlgmr.msra.gmra.mxu0 %vm1605_vm9, %v2766_v25  ;;  %v1997_v7 = vpop.f32.mrf.mxu1 }
 0x393   : > { %v2475_v46 = vsel %vm464_vm2, %v3087_v51, %v3088_v34  ;;  %v2476_v42 = vsel %vm464_vm2, %v3088_v34, %v2474_v49 }
 0x394   : > { %2506 = vmatpush.msrb.mxu2 %v2475_v46  ;;  %2535 = vmatpush.msrb.mxu3 %v2476_v42 }
 0x395   : > { %v1554_v4 = vpop.permute.xlu0 %1553  ;;  %2783 = vmatmul.msk.f32.vlgmr.msrb.gmra.mxu2 %vm1605_vm9, %v2779_v20  ;;  %2787 = vmatmul.msk.f32.vlgmr.msrb.gmra.mxu3 %vm1605_vm9, %v2779_v20 }
 0x396   : > { %v1678_v16 = vadd.f32 %v1638_v26, %v1554_v4  ;;  %v1679_v63 = vadd.f32 %v1667_v43, %v1554_v4 }
 0x398   : > { %v1789_v28 = vadd.f32 %v1749_v29, %v1678_v16  ;;  %v1790_v18 = vadd.f32 %v1778_v22, %v1679_v63  ;;  %v2363_v9 = vpop.permute.xlu1 %2362 }
 0x399   : > { %v2365_v39 = vsel %vm589_vm1, %v3093_v55, %v2363_v9 }
 0x39a   : > { %v4389_v11 = vadd.f32 %v1860_v36, %v1789_v28  ;;  %v4391_v35 = vadd.f32 %v1889_v59, %v1790_v18  ;;  %2771 = vmatmul.msk.f32.gmra.mxu0 %vm1605_vm9, %v2767_v56  ;;  %2424 = vmatpush.msra.mxu1 %v2365_v39  ;;  %v2000_v22 = vpop.f32.mrf.mxu1  ;;  %v2064_v36 = vpop.f32.mrf.mxu2 }
 0x39b   : > { %2774 = vmatmul.msk.f32.vlgmr.msra.gmra.mxu1 %vm1605_vm9, %v2766_v25  ;;  %v2093_v59 = vpop.f32.mrf.mxu3  ;;  %v2010_v25 = vadd.f32 %v1997_v7, %v4367_v40 }
 0x39c   : > { %v2012_v63 = vadd.f32 %v2000_v22, %v4391_v35 }
 0x39d   : > { %2784 = vmatmul.msk.f32.gmra.mxu2 %vm1605_vm9, %v2780_v62  ;;  %2788 = vmatmul.msk.f32.gmra.mxu3 %vm1605_vm9, %v2780_v62  ;;  %v2103_v20 = vadd.f32 %v2090_v33, %v2010_v25 }
 0x39e   : > { %v2105_v62 = vadd.f32 %v2093_v59, %v2012_v63 }
 0x3a0   : > { %v1559_v31 = vpop.permute.xlu1 %1558 }
 0x3a1   : > { %v1680_v57 = vadd.f32 %v4353_v44, %v1559_v31  ;;  %v1681_v10 = vadd.f32 %v4355_v21, %v1559_v31  ;;  %v2782_v44 = vld [vmem:[%s4477_s5 + $0x118] sm:$0xff]  ;;  %v1968_v21 = vpop.f32.mrf.mxu0 }
 0x3a2   : > { %2772 = vmatmul.msk.f32.gmra.mxu0 %vm1605_vm9, %v2768_v61  ;;  %v2009_v0 = vadd.f32 %v1968_v21, %v4365_v6 }
 0x3a3   : > { %2775 = vmatmul.msk.f32.gmra.mxu1 %vm1605_vm9, %v2767_v56  ;;  %v1791_v26 = vadd.f32 %v4357_v3, %v1680_v57  ;;  %v1792_v43 = vadd.f32 %v4359_v41, %v1681_v10  ;;  %v2003_v3 = vpop.f32.mrf.mxu1  ;;  %v2067_v41 = vpop.f32.mrf.mxu2 }
 0x3a4   : > { %v2102_v53 = vadd.f32 %v2061_v38, %v2009_v0 }
 0x3a5   : > { %2785 = vmatmul.msk.f32.gmra.mxu2 %vm1605_vm9, %v2781_v23  ;;  %2789 = vmatmul.msk.f32.gmra.mxu3 %vm1605_vm9, %v2781_v23  ;;  %v4418_v37 = vadd.f32 %v4361_v2, %v1791_v26  ;;  %v4421_v17 = vadd.f32 %v4363_v52, %v1792_v43  ;;  %v2096_v2 = vpop.f32.mrf.mxu3 }
 0x3a9   : > { %v1971_v29 = vpop.f32.mrf.mxu0 }
 0x3aa   : > { %2773 = vmatmul.msk.f32.gmra.mxu0 %vm1605_vm9, %v2769_v1  ;;  %v2011_v4 = vadd.f32 %v1971_v29, %v4389_v11 }
 0x3ab   : > { %2776 = vmatmul.msk.f32.gmra.mxu1 %vm1605_vm9, %v2768_v61  ;;  %v4431_v52 = vpop.f32.mrf.mxu1  ;;  %v4433_v5 = vpop.f32.mrf.mxu2 }
 0x3ac   : > { %v2104_v28 = vadd.f32 %v2064_v36, %v2011_v4 }
 0x3ad   : > { %2786 = vmatmul.msk.f32.gmra.mxu2 %vm1605_vm9, %v2782_v44  ;;  %2790 = vmatmul.msk.f32.gmra.mxu3 %vm1605_vm9, %v2782_v44  ;;  %v4435_v32 = vpop.f32.mrf.mxu3 }
 0x3b1   : > { %v1974_v49 = vpop.f32.mrf.mxu0 }
 0x3b2   : > { %v2013_v35 = vadd.f32 %v1974_v49, %v4418_v37 }
 0x3b3   : > { %2777 = vmatmul.msk.f32.gmra.mxu1 %vm1605_vm9, %v2769_v1  ;;  %v2204_v15 = vpop.f32.mrf.mxu1  ;;  %v2286_v8 = vpop.f32.mrf.mxu2  ;;  %v2014_v1 = vadd.f32 %v2003_v3, %v4421_v17 }
 0x3b4   : > { %v2217_v16 = vadd.f32 %v2204_v15, %v2103_v20  ;;  %v2106_v38 = vadd.f32 %v2067_v41, %v2013_v35 }
 0x3b5   : > { %v2315_v50 = vpop.f32.mrf.mxu3  ;;  %v2107_v37 = vadd.f32 %v2096_v2, %v2014_v1 }
 0x3b6   : > { %v2328_v6 = vadd.f32 %v2315_v50, %v2217_v16  ;;  %v2016_v50 = vadd.f32 %v4431_v52, %v4371_v60 }
 0x3b9   : > { %v1977_v45 = vpop.f32.mrf.mxu0 }
 0x3ba   : > { %v2015_v15 = vadd.f32 %v1977_v45, %v4369_v54  ;;  %v2109_v54 = vadd.f32 %v4435_v32, %v2016_v50 }
 0x3bb   : > { %v2207_v48 = vpop.f32.mrf.mxu1  ;;  %v2289_v27 = vpop.f32.mrf.mxu2 }
 0x3bc   : > { %v2219_v11 = vadd.f32 %v2207_v48, %v2105_v62  ;;  %v2108_v48 = vadd.f32 %v4433_v5, %v2015_v15 }
 0x3bd   : > { %v2318_v24 = vpop.f32.mrf.mxu3 }
 0x3be   : > { %v2330_v21 = vadd.f32 %v2318_v24, %v2219_v11 }
 0x3c1   : > { %v2175_v12 = vpop.f32.mrf.mxu0 }
 0x3c2   : > { %v2216_v46 = vadd.f32 %v2175_v12, %v2102_v53 }
 0x3c3   : > { %v2210_v58 = vpop.f32.mrf.mxu1  ;;  %v2292_v13 = vpop.f32.mrf.mxu2 }
 0x3c4   : > { %v2327_v56 = vadd.f32 %v2286_v8, %v2216_v46  ;;  %v2221_v3 = vadd.f32 %v2210_v58, %v2107_v37 }
 0x3c5   : > { %v2321_v14 = vpop.f32.mrf.mxu3 }
 0x3c6   : > { %v2332_v24 = vadd.f32 %v2321_v14, %v2221_v3 }
 0x3c9   : > { %v2178_v47 = vpop.f32.mrf.mxu0 }
 0x3ca   : > { %v2218_v61 = vadd.f32 %v2178_v47, %v2104_v28 }
 0x3cb   : > { %v2213_v34 = vpop.f32.mrf.mxu1  ;;  %v4439_v51 = vpop.f32.mrf.mxu2 }
 0x3cc   : > { %v2329_v43 = vadd.f32 %v2289_v27, %v2218_v61  ;;  %v2223_v53 = vadd.f32 %v2213_v34, %v2109_v54 }
 0x3cd   : > { %v4441_v42 = vpop.f32.mrf.mxu3 }
 0x3ce   : > { %v2334_v14 = vadd.f32 %v4441_v42, %v2223_v53 }
 0x3d1   : > { %v2181_v30 = vpop.f32.mrf.mxu0 }
 0x3d2   : > { %v2220_v22 = vadd.f32 %v2181_v30, %v2106_v38 }
 0x3d4   : > { %v2331_v47 = vadd.f32 %v2292_v13, %v2220_v22 }
 0x3d9   : > { %v2184_v55 = vpop.f32.mrf.mxu0 }
 0x3da   : > { %v2222_v45 = vadd.f32 %v2184_v55, %v2108_v48 }
 0x3dc   : > { %v2333_v5 = vadd.f32 %v4439_v51, %v2222_v45 }
 0x40f   : > { %v2397_v19 = vpop.f32.mrf.mxu0 }
 0x410   : > { %v2438_v18 = vadd.f32 %v2397_v19, %v2327_v56 }
 0x417   : > { %v2400_v40 = vpop.f32.mrf.mxu0 }
 0x418   : > { %v2426_v9 = vpop.f32.mrf.mxu1  ;;  %v2508_v39 = vpop.f32.mrf.mxu2  ;;  %v2440_v7 = vadd.f32 %v2400_v40, %v2329_v43 }
 0x419   : > { %v2439_v23 = vadd.f32 %v2426_v9, %v2328_v6  ;;  %v2549_v31 = vadd.f32 %v2508_v39, %v2438_v18  ;;  %v2537_v57 = vpop.f32.mrf.mxu3 }
 0x41b   : > { %v2557_v10 = vmax.f32 %v2549_v31, 0.0  ;;  %v2550_v26 = vadd.f32 %v2537_v57, %v2439_v23 }
 0x41d   : > { %2565 = vst [vmem:[%s4450_s11] sm:$0xff] %v2557_v10  ;;  %v2558_v44 = vmax.f32 %v2550_v26, 0.0 }
 0x41f   : > { %2566 = vst [vmem:[%s4450_s11 + $0x8] sm:$0xff] %v2558_v44  ;;  %v2403_v49 = vpop.f32.mrf.mxu0 }
 0x420   : > { %v2429_v33 = vpop.f32.mrf.mxu1  ;;  %v2511_v29 = vpop.f32.mrf.mxu2  ;;  %v2442_v27 = vadd.f32 %v2403_v49, %v2331_v47 }
 0x421   : > { %v2441_v36 = vadd.f32 %v2429_v33, %v2330_v21  ;;  %v2551_v59 = vadd.f32 %v2511_v29, %v2440_v7  ;;  %v2540_v12 = vpop.f32.mrf.mxu3 }
 0x423   : > { %v2559_v8 = vmax.f32 %v2551_v59, 0.0  ;;  %v2552_v17 = vadd.f32 %v2540_v12, %v2441_v36 }
 0x425   : > { %2567 = vst [vmem:[%s4450_s11 + $0x10] sm:$0xff] %v2559_v8  ;;  %v2560_v41 = vmax.f32 %v2552_v17, 0.0 }
 0x427   : > { %2568 = vst [vmem:[%s4450_s11 + $0x18] sm:$0xff] %v2560_v41  ;;  %v2406_v13 = vpop.f32.mrf.mxu0 }
 0x428   : > { %v2432_v30 = vpop.f32.mrf.mxu1  ;;  %v2514_v2 = vpop.f32.mrf.mxu2  ;;  %v2444_v20 = vadd.f32 %v2406_v13, %v2333_v5 }
 0x429   : > { %v2443_v0 = vadd.f32 %v2432_v30, %v2332_v24  ;;  %v2553_v58 = vadd.f32 %v2514_v2, %v2442_v27  ;;  %v2543_v25 = vpop.f32.mrf.mxu3 }
 0x42b   : > { %v2561_v60 = vmax.f32 %v2553_v58, 0.0  ;;  %v2554_v52 = vadd.f32 %v2543_v25, %v2443_v0 }
 0x42d   : > { %2569 = vst [vmem:[%s4450_s11 + $0x20] sm:$0xff] %v2561_v60  ;;  %v2562_v19 = vmax.f32 %v2554_v52, 0.0 }
 0x42f   : > { %2570 = vst [vmem:[%s4450_s11 + $0x28] sm:$0xff] %v2562_v19 }
 0x430   : > { %v2435_v46 = vpop.f32.mrf.mxu1  ;;  %v2517_v32 = vpop.f32.mrf.mxu2 }
 0x431   : > { %v2445_v55 = vadd.f32 %v2435_v46, %v2334_v14  ;;  %v2555_v4 = vadd.f32 %v2517_v32, %v2444_v20  ;;  %v2546_v16 = vpop.f32.mrf.mxu3 }
 0x433   : > { %v2563_v63 = vmax.f32 %v2555_v4, 0.0  ;;  %v2556_v34 = vadd.f32 %v2546_v16, %v2445_v55 }
 0x435   : > { %2571 = vst [vmem:[%s4450_s11 + $0x30] sm:$0xff] %v2563_v63  ;;  %v2564_v56 = vmax.f32 %v2556_v34, 0.0 }
 0x437   : > { %2572 = vst [vmem:[%s4450_s11 + $0x38] sm:$0xff] %v2564_v56 }
 0x438 PF: > { %s18_s27 = sadd.s32 1, %s3101_s27  }
 0x439   : > { %p15_p4 = scmp.ge.s32.totalorder %s18_s27, 4  }
 0x43b   :  { %17 = sbr.rel (!%p15_p4) target bundleno = 1 (0x1), region = 106 }

</bundles_post_ra>
